<compile_context>
chip_gen: v7x
topology: tpu7x:2x2x1
jax: 0.10.0
libtpu: 0.0.40
codegen_flags: <defaults>
</compile_context>

<pallas_src>
import jax
import jax.numpy as jnp
from jax.experimental import pallas as pl
from jax.experimental.pallas import tpu as pltpu

_LANE = 128          # vreg lane width
_BATCH_GRANULE = 16  # batch-tile granule: multiple of 8 sublanes, and safe for
                     # the bf16 (16, 128) output tiling


def _round_up(x, m):
    return ((x + m - 1) // m) * m


def _tensorcores_per_chip():
    """v7x has 2 TensorCores per chip that share 'parallel' grid axes;
    v5e / v6e have 1 (splitting the grid there is pure per-step overhead)."""
    try:
        kind = jax.devices()[0].device_kind.lower()
    except Exception:
        return 1
    return 2 if "v7" in kind else 1


def _select_batch_tile(batch, batch_tile, num_cores):
    """Pick (tb, b_pad) such that:
      * tb is a multiple of _BATCH_GRANULE and <= batch_tile (when possible),
      * b_pad % tb == 0,
      * preferring NO batch padding (tb divides batch) and a grid step count
        that is a multiple of num_cores (balanced v7x megacore sharding;
        num_cores == 1 on v5e/v6e reduces this to "fewest steps")."""
    cap = min(batch_tile, _round_up(batch, _BATCH_GRANULE))
    cap = max(_BATCH_GRANULE, (cap // _BATCH_GRANULE) * _BATCH_GRANULE)

    if batch % _BATCH_GRANULE == 0:
        divisors = [d for d in range(_BATCH_GRANULE, cap + 1, _BATCH_GRANULE)
                    if batch % d == 0]
        if divisors:
            balanced = [d for d in divisors if (batch // d) % num_cores == 0]
            tb = max(balanced) if balanced else max(divisors)
            return tb, batch                      # no per-call padding needed

    # Fallback: pad the batch up to a multiple of the tile.
    tb = cap
    return tb, _round_up(batch, tb)


def _mlp_kernel(x_ref, w1_ref, b1_ref, w2_ref, b2_ref,
                w3_ref, b3_ref, w4_ref, b4_ref, o_ref):
    """Fused 4x (Linear [+ ReLU]) forward on one batch tile.

    x arrives as f32 and is cast to bf16 in-kernel (free VPU op); weights are
    bf16 (MXU-native); accumulation, bias-add and ReLU happen in f32;
    activations are cast back to bf16 before the next matmul.
    Dropout (p=0.5) is identity (eval-mode semantics)."""
    h = x_ref[...].astype(jnp.bfloat16)                             # (tb, D_in)

    # fc1 + (dropout == identity) + relu
    a = jnp.dot(h, w1_ref[...], preferred_element_type=jnp.float32) + b1_ref[...]
    h = jnp.maximum(a, 0.0).astype(jnp.bfloat16)

    # fc2 + (dropout == identity) + relu
    a = jnp.dot(h, w2_ref[...], preferred_element_type=jnp.float32) + b2_ref[...]
    h = jnp.maximum(a, 0.0).astype(jnp.bfloat16)

    # fc3 + (dropout == identity) + relu
    a = jnp.dot(h, w3_ref[...], preferred_element_type=jnp.float32) + b3_ref[...]
    h = jnp.maximum(a, 0.0).astype(jnp.bfloat16)

    # fc4 (logits, no activation) -- lane-dense (tb, 128) bf16 store
    o_ref[...] = (jnp.dot(h, w4_ref[...], preferred_element_type=jnp.float32)
                  + b4_ref[...]).astype(o_ref.dtype)


def prepare_params(params):
    """Pad every layer's output (and matching next-layer input) dim up to a
    multiple of 128 with zeros, cast weights to bf16.  Done ONCE per model,
    outside the per-step forward call.  Biases stay f32 (added to f32 acc).

    Returns (padded_params, num_classes)."""
    def pad2d(w, rows, cols):
        return jnp.pad(w, ((0, rows - w.shape[0]), (0, cols - w.shape[1])))

    d_in, h = params["w1"].shape
    d2 = params["w2"].shape[1]
    d3 = params["w3"].shape[1]
    c = params["w4"].shape[1]
    hp, d2p, d3p, cp = (_round_up(d, _LANE) for d in (h, d2, d3, c))

    padded = {
        "w1": pad2d(params["w1"], d_in, hp).astype(jnp.bfloat16),
        "b1": pad2d(params["b1"], 1, hp),
        "w2": pad2d(params["w2"], hp, d2p).astype(jnp.bfloat16),
        "b2": pad2d(params["b2"], 1, d2p),
        "w3": pad2d(params["w3"], d2p, d3p).astype(jnp.bfloat16),
        "b3": pad2d(params["b3"], 1, d3p),
        "w4": pad2d(params["w4"], d3p, cp).astype(jnp.bfloat16),
        "b4": pad2d(params["b4"], 1, cp),
    }
    return padded, c


def mlp_forward(x, padded_params, num_classes, *, batch_tile=512):
    """x: (B, D_in) float32.  padded_params from prepare_params().
    Returns (B, num_classes) float32 logits."""
    B, d_in = x.shape
    hp = padded_params["w1"].shape[1]
    d2p = padded_params["w2"].shape[1]
    d3p = padded_params["w3"].shape[1]
    cp = padded_params["w4"].shape[1]

    num_cores = _tensorcores_per_chip()
    tb, b_pad = _select_batch_tile(B, batch_tile, num_cores)

    if b_pad != B:
        # Only hit when no tile-sized divisor of B exists (B not a multiple of
        # the 16-row granule); padded rows compute garbage that is sliced away.
        x = jnp.pad(x, ((0, b_pad - B), (0, 0)))

    grid = (b_pad // tb,)

    # Replicated (constant index_map) weight/bias blocks; total footprint is
    # <200 KiB in bf16, so default double-buffering is negligible here.
    def rep(shape):
        return pl.BlockSpec(shape, lambda i: (0, 0))

    in_specs = [
        pl.BlockSpec((tb, d_in), lambda i: (i, 0)),     # x: tiled over batch, f32
        rep((d_in, hp)), rep((1, hp)),
        rep((hp, d2p)),  rep((1, d2p)),
        rep((d2p, d3p)), rep((1, d3p)),
        rep((d3p, cp)),  rep((1, cp)),
    ]
    out_spec = pl.BlockSpec((tb, cp), lambda i: (i, 0))  # lane-dense bf16 output

    # VMEM budget (bytes): bf16 weights + f32 biases, double-buffered f32 x and
    # bf16 out tiles, plus f32 activation intermediates; 2x headroom + 16 MiB,
    # capped at v7x's 64 MiB physical VMEM.  At tb=512 this is ~20 MiB, so the
    # budget never constrains the tile size.
    w_bytes = 2 * (d_in * hp + hp * d2p + d2p * d3p + d3p * cp)
    bias_bytes = 4 * (hp + d2p + d3p + cp)
    io_bytes = 4 * (2 * tb * d_in) + 2 * (2 * tb * cp)
    act_bytes = 4 * tb * (hp + d2p + d3p + cp)
    vmem_limit = min(64 * 1024 * 1024,
                     2 * (w_bytes + bias_bytes + io_bytes + act_bytes) + (16 << 20))

    out_padded = pl.pallas_call(
        _mlp_kernel,
        out_shape=jax.ShapeDtypeStruct((b_pad, cp), jnp.bfloat16),
        grid_spec=pltpu.PrefetchScalarGridSpec(
            num_scalar_prefetch=0,
            grid=grid,
            in_specs=in_specs,
            out_specs=out_spec,
        ),
        compiler_params=pltpu.CompilerParams(
            dimension_semantics=("parallel",),
            vmem_limit_bytes=vmem_limit,
        ),
    )(x,
      padded_params["w1"], padded_params["b1"],
      padded_params["w2"], padded_params["b2"],
      padded_params["w3"], padded_params["b3"],
      padded_params["w4"], padded_params["b4"])

    # Slice away class/batch padding and restore f32 logits (one small fused op).
    return out_padded[:B, :num_classes].astype(jnp.float32)


def init_params(key, input_size, hidden_size, num_classes):
    """Deterministic init mimicking nn.Linear: U(-1/sqrt(fan_in), 1/sqrt(fan_in)).
    Weights stored as (in_features, out_features)."""
    dims = [(input_size, hidden_size), (hidden_size, 200), (200, 100),
            (100, num_classes)]
    params = {}
    for idx, (fan_in, fan_out) in enumerate(dims, start=1):
        key, kw, kb = jax.random.split(key, 3)
        bound = 1.0 / jnp.sqrt(jnp.float32(fan_in))
        params[f"w{idx}"] = jax.random.uniform(
            kw, (fan_in, fan_out), jnp.float32, -bound, bound)
        params[f"b{idx}"] = jax.random.uniform(
            kb, (1, fan_out), jnp.float32, -bound, bound)
    return params


def mlp_reference(x, params):
    """Pure-f32 reference of the PyTorch forward (dropout = identity)."""
    h = jnp.maximum(x @ params["w1"] + params["b1"], 0.0)
    h = jnp.maximum(h @ params["w2"] + params["b2"], 0.0)
    h = jnp.maximum(h @ params["w3"] + params["b3"], 0.0)
    return h @ params["w4"] + params["b4"]


if __name__ == "__main__":
    input_size, hidden_size, num_classes = 64, 32, 10
    batch = 256  # single grid step on v5e/v6e; 2 balanced steps of 128 on v7x

    key = jax.random.PRNGKey(0)
    key, kx = jax.random.split(key)
    x = jax.random.normal(kx, (batch, input_size), jnp.float32)
    params = init_params(key, input_size, hidden_size, num_classes)

    padded_params, n_classes = prepare_params(params)
    out = mlp_forward(x, padded_params, n_classes)
    out = jax.block_until_ready(out)

    ref = mlp_reference(x, params)
    assert out.shape == (batch, num_classes)
    max_err = jnp.max(jnp.abs(out - ref))
    assert jnp.allclose(out, ref, atol=5e-2, rtol=5e-2), (
        f"mismatch vs reference (max abs err {max_err})")

    print("KERNEL_OK")
</pallas_src>

<mosaic_0001>
module attributes {stable_mosaic.version = 11 : i64} {
  func.func @_mlp_kernel(%arg0: i32, %arg1: memref<256x64xf32, #tpu.memory_space<vmem>>, %arg2: memref<64x128xbf16, #tpu.memory_space<vmem>>, %arg3: memref<1x128xf32, #tpu.memory_space<vmem>>, %arg4: memref<128x256xbf16, #tpu.memory_space<vmem>>, %arg5: memref<1x256xf32, #tpu.memory_space<vmem>>, %arg6: memref<256x128xbf16, #tpu.memory_space<vmem>>, %arg7: memref<1x128xf32, #tpu.memory_space<vmem>>, %arg8: memref<128x128xbf16, #tpu.memory_space<vmem>>, %arg9: memref<1x128xf32, #tpu.memory_space<vmem>>, %arg10: memref<256x128xbf16, #tpu.memory_space<vmem>>) attributes {dimension_semantics = [#tpu.dimension_semantics<parallel>], iteration_bounds = array<i64: 1>, scalar_prefetch = 0 : i64, scratch_operands = 0 : i64, tpu.core_type = #tpu.core_type<tc>, window_params = [{transform_indices = @transform_0, window_bounds = array<i64: 256, 64>}, {pipeline_mode = #tpu.pipeline_mode<synchronous>, transform_indices = @transform_1, window_bounds = array<i64: 64, 128>}, {pipeline_mode = #tpu.pipeline_mode<synchronous>, transform_indices = @transform_2, window_bounds = array<i64: 1, 128>}, {pipeline_mode = #tpu.pipeline_mode<synchronous>, transform_indices = @transform_3, window_bounds = array<i64: 128, 256>}, {pipeline_mode = #tpu.pipeline_mode<synchronous>, transform_indices = @transform_4, window_bounds = array<i64: 1, 256>}, {pipeline_mode = #tpu.pipeline_mode<synchronous>, transform_indices = @transform_5, window_bounds = array<i64: 256, 128>}, {pipeline_mode = #tpu.pipeline_mode<synchronous>, transform_indices = @transform_6, window_bounds = array<i64: 1, 128>}, {pipeline_mode = #tpu.pipeline_mode<synchronous>, transform_indices = @transform_7, window_bounds = array<i64: 128, 128>}, {pipeline_mode = #tpu.pipeline_mode<synchronous>, transform_indices = @transform_8, window_bounds = array<i64: 1, 128>}, {transform_indices = @transform_9, window_bounds = array<i64: 256, 128>}]} {
    %c0 = arith.constant 0 : index
    %c0_0 = arith.constant 0 : index
    %0 = vector.load %arg1[%c0, %c0_0] : memref<256x64xf32, #tpu.memory_space<vmem>>, vector<256x64xf32>
    %1 = arith.truncf %0 : vector<256x64xf32> to vector<256x64xbf16>
    %c0_1 = arith.constant 0 : index
    %c0_2 = arith.constant 0 : index
    %2 = vector.load %arg2[%c0_1, %c0_2] : memref<64x128xbf16, #tpu.memory_space<vmem>>, vector<64x128xbf16>
    %cst = arith.constant dense<0.000000e+00> : vector<256x128xf32>
    %3 = tpu.matmul %1, %2, %cst {dimension_numbers = #tpu.dot_dimension_numbers<[1], [0], [0], [1], [0, 0, 1, 1], [], []>} : vector<256x64xbf16>, vector<64x128xbf16>, vector<256x128xf32> -> vector<256x128xf32>
    %c0_3 = arith.constant 0 : index
    %c0_4 = arith.constant 0 : index
    %4 = vector.load %arg3[%c0_3, %c0_4] : memref<1x128xf32, #tpu.memory_space<vmem>>, vector<1x128xf32>
    %5 = vector.broadcast %4 : vector<1x128xf32> to vector<256x128xf32>
    %6 = arith.addf %3, %5 : vector<256x128xf32>
    %cst_5 = arith.constant 0.000000e+00 : f32
    %7 = vector.broadcast %cst_5 : f32 to vector<256x128xf32>
    %8 = arith.maximumf %6, %7 : vector<256x128xf32>
    %9 = arith.truncf %8 : vector<256x128xf32> to vector<256x128xbf16>
    %c0_6 = arith.constant 0 : index
    %c0_7 = arith.constant 0 : index
    %10 = vector.load %arg4[%c0_6, %c0_7] : memref<128x256xbf16, #tpu.memory_space<vmem>>, vector<128x256xbf16>
    %cst_8 = arith.constant dense<0.000000e+00> : vector<256x256xf32>
    %11 = tpu.matmul %9, %10, %cst_8 {dimension_numbers = #tpu.dot_dimension_numbers<[1], [0], [0], [1], [0, 0, 1, 1], [], []>} : vector<256x128xbf16>, vector<128x256xbf16>, vector<256x256xf32> -> vector<256x256xf32>
    %c0_9 = arith.constant 0 : index
    %c0_10 = arith.constant 0 : index
    %12 = vector.load %arg5[%c0_9, %c0_10] : memref<1x256xf32, #tpu.memory_space<vmem>>, vector<1x256xf32>
    %13 = vector.broadcast %12 : vector<1x256xf32> to vector<256x256xf32>
    %14 = arith.addf %11, %13 : vector<256x256xf32>
    %cst_11 = arith.constant 0.000000e+00 : f32
    %15 = vector.broadcast %cst_11 : f32 to vector<256x256xf32>
    %16 = arith.maximumf %14, %15 : vector<256x256xf32>
    %17 = arith.truncf %16 : vector<256x256xf32> to vector<256x256xbf16>
    %c0_12 = arith.constant 0 : index
    %c0_13 = arith.constant 0 : index
    %18 = vector.load %arg6[%c0_12, %c0_13] : memref<256x128xbf16, #tpu.memory_space<vmem>>, vector<256x128xbf16>
    %cst_14 = arith.constant dense<0.000000e+00> : vector<256x128xf32>
    %19 = tpu.matmul %17, %18, %cst_14 {dimension_numbers = #tpu.dot_dimension_numbers<[1], [0], [0], [1], [0, 0, 1, 1], [], []>} : vector<256x256xbf16>, vector<256x128xbf16>, vector<256x128xf32> -> vector<256x128xf32>
    %c0_15 = arith.constant 0 : index
    %c0_16 = arith.constant 0 : index
    %20 = vector.load %arg7[%c0_15, %c0_16] : memref<1x128xf32, #tpu.memory_space<vmem>>, vector<1x128xf32>
    %21 = vector.broadcast %20 : vector<1x128xf32> to vector<256x128xf32>
    %22 = arith.addf %19, %21 : vector<256x128xf32>
    %cst_17 = arith.constant 0.000000e+00 : f32
    %23 = vector.broadcast %cst_17 : f32 to vector<256x128xf32>
    %24 = arith.maximumf %22, %23 : vector<256x128xf32>
    %25 = arith.truncf %24 : vector<256x128xf32> to vector<256x128xbf16>
    %c0_18 = arith.constant 0 : index
    %c0_19 = arith.constant 0 : index
    %26 = vector.load %arg8[%c0_18, %c0_19] : memref<128x128xbf16, #tpu.memory_space<vmem>>, vector<128x128xbf16>
    %cst_20 = arith.constant dense<0.000000e+00> : vector<256x128xf32>
    %27 = tpu.matmul %25, %26, %cst_20 {dimension_numbers = #tpu.dot_dimension_numbers<[1], [0], [0], [1], [0, 0, 1, 1], [], []>} : vector<256x128xbf16>, vector<128x128xbf16>, vector<256x128xf32> -> vector<256x128xf32>
    %c0_21 = arith.constant 0 : index
    %c0_22 = arith.constant 0 : index
    %28 = vector.load %arg9[%c0_21, %c0_22] : memref<1x128xf32, #tpu.memory_space<vmem>>, vector<1x128xf32>
    %29 = vector.broadcast %28 : vector<1x128xf32> to vector<256x128xf32>
    %30 = arith.addf %27, %29 : vector<256x128xf32>
    %31 = arith.truncf %30 : vector<256x128xf32> to vector<256x128xbf16>
    %c0_23 = arith.constant 0 : index
    %c0_24 = arith.constant 0 : index
    %32 = vector.load %arg10[%c0_23, %c0_24] : memref<256x128xbf16, #tpu.memory_space<vmem>>, vector<256x128xbf16>
    tpu.vector_store %arg10[%c0_23, %c0_24], %31 {strides = array<i32>} : memref<256x128xbf16, #tpu.memory_space<vmem>>, vector<256x128xbf16>,
    return
  }
  func.func @transform_0(%arg0: i32) -> (i32, i32) {
    %c0_i32 = arith.constant 0 : i32
    %c0_i32_0 = arith.constant 0 : i32
    return %arg0, %c0_i32 : i32, i32
  }
  func.func @transform_1(%arg0: i32) -> (i32, i32) {
    %c0_i32 = arith.constant 0 : i32
    %c0_i32_0 = arith.constant 0 : i32
    %c0_i32_1 = arith.constant 0 : i32
    return %c0_i32, %c0_i32_0 : i32, i32
  }
  func.func @transform_2(%arg0: i32) -> (i32, i32) {
    %c0_i32 = arith.constant 0 : i32
    %c0_i32_0 = arith.constant 0 : i32
    %c0_i32_1 = arith.constant 0 : i32
    return %c0_i32, %c0_i32_0 : i32, i32
  }
  func.func @transform_3(%arg0: i32) -> (i32, i32) {
    %c0_i32 = arith.constant 0 : i32
    %c0_i32_0 = arith.constant 0 : i32
    %c0_i32_1 = arith.constant 0 : i32
    return %c0_i32, %c0_i32_0 : i32, i32
  }
  func.func @transform_4(%arg0: i32) -> (i32, i32) {
    %c0_i32 = arith.constant 0 : i32
    %c0_i32_0 = arith.constant 0 : i32
    %c0_i32_1 = arith.constant 0 : i32
    return %c0_i32, %c0_i32_0 : i32, i32
  }
  func.func @transform_5(%arg0: i32) -> (i32, i32) {
    %c0_i32 = arith.constant 0 : i32
    %c0_i32_0 = arith.constant 0 : i32
    %c0_i32_1 = arith.constant 0 : i32
    return %c0_i32, %c0_i32_0 : i32, i32
  }
  func.func @transform_6(%arg0: i32) -> (i32, i32) {
    %c0_i32 = arith.constant 0 : i32
    %c0_i32_0 = arith.constant 0 : i32
    %c0_i32_1 = arith.constant 0 : i32
    return %c0_i32, %c0_i32_0 : i32, i32
  }
  func.func @transform_7(%arg0: i32) -> (i32, i32) {
    %c0_i32 = arith.constant 0 : i32
    %c0_i32_0 = arith.constant 0 : i32
    %c0_i32_1 = arith.constant 0 : i32
    return %c0_i32, %c0_i32_0 : i32, i32
  }
  func.func @transform_8(%arg0: i32) -> (i32, i32) {
    %c0_i32 = arith.constant 0 : i32
    %c0_i32_0 = arith.constant 0 : i32
    %c0_i32_1 = arith.constant 0 : i32
    return %c0_i32, %c0_i32_0 : i32, i32
  }
  func.func @transform_9(%arg0: i32) -> (i32, i32) {
    %c0_i32 = arith.constant 0 : i32
    %c0_i32_0 = arith.constant 0 : i32
    return %arg0, %c0_i32 : i32, i32
  }
}

</mosaic_0001>

<bundles_post_ra>
// kernel: tpu_custom_call.1
= control target key start
LH: loop header
LB: loop body
LE: loop exit
PB: predicated region body
PF: predicated region fallthrough
CT: control target
= control target key end

     0   :  { %vm121_vm0 = vcmask 523264   ;;  %s2601_s0 = inlined_call_operand.vmem [shape: f32[256,64], index: 0, kind: input, shape index: {}]   ;;  %s2602_s1 = inlined_call_operand.vmem [shape: bf16[64,128], index: 1, kind: input, shape index: {}]   ;;  %s2603_s2 = inlined_call_operand.vmem [shape: f32[1,128], index: 2, kind: input, shape index: {}]   ;;  %s2604_s3 = inlined_call_operand.vmem [shape: bf16[128,256], index: 3, kind: input, shape index: {}]   ;;  %s2605_s4 = inlined_call_operand.vmem [shape: f32[1,256], index: 4, kind: input, shape index: {}]   ;;  %s2606_s5 = inlined_call_operand.vmem [shape: bf16[256,128], index: 5, kind: input, shape index: {}]   ;;  %s2607_s6 = inlined_call_operand.vmem [shape: f32[1,128], index: 6, kind: input, shape index: {}]   ;;  %s2608_s7 = inlined_call_operand.vmem [shape: bf16[128,128], index: 7, kind: input, shape index: {}]   ;;  %s2609_s8 = inlined_call_operand.vmem [shape: f32[1,128], index: 8, kind: input, shape index: {}]   ;;  %s2610_s9 = inlined_call_operand.hbm [shape: bf16[256,128], index: 9, kind: output, shape index: {}]  }
   0x1   :  { %v2014_v0 = vld [vmem:[%s2602_s1] sm:$0xff]   ;;  %v2015_v1 = vld [vmem:[%s2602_s1 + $0x8] sm:$0xff]   ;;  %v2016_v2 = vld [vmem:[%s2602_s1 + $0x10] sm:$0xff]  }
   0x2   :  { %1906 = vmatprep.subr.bf16.mxu0 %v2014_v0  ;;  %v34_v3 = vld [vmem:[%s2601_s0] sm:$0xff]  ;;  %v35_v4 = vld [vmem:[%s2601_s0 + $0x8] sm:$0xff]  ;;  %v2017_v6 = vld [vmem:[%s2602_s1 + $0x18] sm:$0xff]  }
   0x3   :  { %1907 = vmatpush3.bf16.msra.mxu0 %v2014_v0  ;;  %v66_v5 = vpack.c.bf16 %v35_v4, %v34_v3  ;;  %v36_v7 = vld [vmem:[%s2601_s0 + $0x10] sm:$0xff]  ;;  %v37_v8 = vld [vmem:[%s2601_s0 + $0x18] sm:$0xff]  ;;  %v38_v9 = vld [vmem:[%s2601_s0 + $0x20] sm:$0xff] }
   0x4   :  { %1908 = vmatprep.subr.bf16.mxu0 %v2015_v1  ;;  %v39_v10 = vld [vmem:[%s2601_s0 + $0x28] sm:$0xff]  ;;  %v67_v11 = vpack.c.bf16 %v37_v8, %v36_v7  ;;  %v2021_v15 = vld [vmem:[%s2604_s3 + $0x14] ss:$8 sps:$4 sm:$0xff]   ;;  %v2023_v18 = vld [vmem:[%s2604_s3 + $0x10] ss:$8 sps:$4 sm:$0xff]  }
   0x5   :  { %1914 = vmatprep.mubr.msk.bf16.mxu0 %vm121_vm0, %v66_v5  ;;  %v68_v12 = vpack.c.bf16 %v39_v10, %v38_v9  ;;  %v2018_v13 = vld [vmem:[%s2604_s3 + $0x4] ss:$8 sps:$4 sm:$0xff]   ;;  %v2020_v14 = vld [vmem:[%s2604_s3] ss:$8 sps:$4 sm:$0xff]   ;;  %v40_v16 = vld [vmem:[%s2601_s0 + $0x30] sm:$0xff] }
   0x6   :  { %487 = vmatprep.subr.bf16.mxu1 %v2018_v13  ;;  %v41_v17 = vld [vmem:[%s2601_s0 + $0x38] sm:$0xff]  ;;  %v42_v19 = vld [vmem:[%s2601_s0 + $0x40] sm:$0xff]  ;;  %v43_v21 = vld [vmem:[%s2601_s0 + $0x48] sm:$0xff] }
   0x7   :  { %1909 = vmatpush3.bf16.msra.mxu0 %v2015_v1  ;;  %488 = vmatpush1.bf16.msra.mxu1 %v2020_v14  ;;  %v2024_v20 = vld [vmem:[%s2604_s3 + $0x24] ss:$8 sps:$4 sm:$0xff]   ;;  %v69_v22 = vpack.c.bf16 %v41_v17, %v40_v16  ;;  %v2026_v23 = vld [vmem:[%s2604_s3 + $0x20] ss:$8 sps:$4 sm:$0xff]   ;;  %v2027_v24 = vld [vmem:[%s2604_s3 + $0x34] ss:$8 sps:$4 sm:$0xff]   ;;  %v70_v25 = vpack.c.bf16 %v43_v21, %v42_v19 }
   0x8   :  { %1910 = vmatprep.subr.bf16.mxu0 %v2016_v2  ;;  %489 = vmatprep.subr.bf16.mxu1 %v2021_v15  ;;  %v2029_v26 = vld [vmem:[%s2604_s3 + $0x30] ss:$8 sps:$4 sm:$0xff]   ;;  %v2030_v29 = vld [vmem:[%s2604_s3 + $0x44] ss:$8 sps:$4 sm:$0xff]   ;;  %v2032_v32 = vld [vmem:[%s2604_s3 + $0x40] ss:$8 sps:$4 sm:$0xff]  }
   0x9   :  { %v44_v27 = vld [vmem:[%s2601_s0 + $0x50] sm:$0xff]  ;;  %v45_v28 = vld [vmem:[%s2601_s0 + $0x58] sm:$0xff]  ;;  %v46_v30 = vld [vmem:[%s2601_s0 + $0x60] sm:$0xff] }
   0xa   :  { %v47_v31 = vld [vmem:[%s2601_s0 + $0x68] sm:$0xff]  ;;  %v2033_v33 = vld [vmem:[%s2604_s3 + $0x54] ss:$8 sps:$4 sm:$0xff]   ;;  %v71_v34 = vpack.c.bf16 %v45_v28, %v44_v27  ;;  %v2035_v36 = vld [vmem:[%s2604_s3 + $0x50] ss:$8 sps:$4 sm:$0xff]  }
   0xb   :  { %1911 = vmatpush3.bf16.msra.mxu0 %v2016_v2  ;;  %490 = vmatpush1.bf16.msra.mxu1 %v2023_v18  ;;  %v72_v35 = vpack.c.bf16 %v47_v31, %v46_v30  ;;  %v48_v37 = vld [vmem:[%s2601_s0 + $0x70] sm:$0xff]  ;;  %v49_v38 = vld [vmem:[%s2601_s0 + $0x78] sm:$0xff]  ;;  %v50_v39 = vld [vmem:[%s2601_s0 + $0x80] sm:$0xff] }
   0xc   :  { %1912 = vmatprep.subr.bf16.mxu0 %v2017_v6  ;;  %491 = vmatprep.subr.bf16.mxu1 %v2024_v20  ;;  %v51_v40 = vld [vmem:[%s2601_s0 + $0x88] sm:$0xff]  ;;  %v73_v41 = vpack.c.bf16 %v49_v38, %v48_v37 }
   0xd   :  { %v74_v42 = vpack.c.bf16 %v51_v40, %v50_v39 }
   0xf   :  { %1913 = vmatpush3.bf16.msra.mxu0 %v2017_v6  ;;  %492 = vmatpush1.bf16.msra.mxu1 %v2026_v23 }
  0x10   :  { %493 = vmatprep.subr.bf16.mxu1 %v2027_v24 }
  0x12   :  { %1915 = vmatmul.mubr.msk.bf16.vlgmr.msra.gmra.mrb[0].mxu0 %vm121_vm0, %v67_v11 }
  0x13   :  { %1918 = vmatprep.mubr.msk.bf16.mxu0 %vm121_vm0, %v68_v12  ;;  %494 = vmatpush1.bf16.msra.mxu1 %v2029_v26 }
  0x14   :  { %495 = vmatprep.subr.bf16.mxu1 %v2030_v29 }
  0x17   :  { %496 = vmatpush1.bf16.msra.mxu1 %v2032_v32 }
  0x18   :  { %497 = vmatprep.subr.bf16.mxu1 %v2033_v33 }
  0x1a   :  { %1919 = vmatmul.mubr.msk.bf16.gmra.mrb[4].mxu0 %vm121_vm0, %v69_v22 }
  0x1b   :  { %1922 = vmatprep.mubr.msk.bf16.mxu0 %vm121_vm0, %v70_v25  ;;  %498 = vmatpush1.bf16.msra.mxu1 %v2035_v36 }
  0x22   :  { %1923 = vmatmul.mubr.msk.bf16.gmra.mrb[8].mxu0 %vm121_vm0, %v71_v34 }
  0x23   :  { %1926 = vmatprep.mubr.msk.bf16.mxu0 %vm121_vm0, %v72_v35 }
  0x24   :  { %14 = vsyncpa [#allocation3], 0  ;;  %v52_v43 = vld [vmem:[%s2601_s0 + $0x90] sm:$0xff]  ;;  %v53_v44 = vld [vmem:[%s2601_s0 + $0x98] sm:$0xff]  ;;  %v2090_v4 = vmov 0  }
  0x25   :  { %v54_v45 = vld [vmem:[%s2601_s0 + $0xa0] sm:$0xff]  ;;  %v55_v46 = vld [vmem:[%s2601_s0 + $0xa8] sm:$0xff]  ;;  %v75_v47 = vpack.c.bf16 %v53_v44, %v52_v43  ;;  %v56_v49 = vld [vmem:[%s2601_s0 + $0xb0] sm:$0xff]  ;;  %519 = vmatprep.mubr.bf16.mxu1 %v2090_v4 }
  0x26   :  { %v76_v48 = vpack.c.bf16 %v55_v46, %v54_v45  ;;  %v57_v50 = vld [vmem:[%s2601_s0 + $0xb8] sm:$0xff]  ;;  %v58_v51 = vld [vmem:[%s2601_s0 + $0xc0] sm:$0xff]  ;;  %v59_v52 = vld [vmem:[%s2601_s0 + $0xc8] sm:$0xff] }
  0x27   :  { %v77_v53 = vpack.c.bf16 %v57_v50, %v56_v49  ;;  %v78_v54 = vpack.c.bf16 %v59_v52, %v58_v51  ;;  %v60_v55 = vld [vmem:[%s2601_s0 + $0xd0] sm:$0xff]  ;;  %v61_v56 = vld [vmem:[%s2601_s0 + $0xd8] sm:$0xff]  ;;  %v62_v57 = vld [vmem:[%s2601_s0 + $0xe0] sm:$0xff] }
  0x28   :  { %v63_v58 = vld [vmem:[%s2601_s0 + $0xe8] sm:$0xff]  ;;  %v79_v59 = vpack.c.bf16 %v61_v56, %v60_v55  ;;  %v64_v61 = vld [vmem:[%s2601_s0 + $0xf0] sm:$0xff]  ;;  %v65_v62 = vld [vmem:[%s2601_s0 + $0xf8] sm:$0xff] }
  0x29   :  { %v80_v60 = vpack.c.bf16 %v63_v58, %v62_v57  ;;  %v81_v63 = vpack.c.bf16 %v65_v62, %v64_v61  ;;  %v2036_v0 = vld [vmem:[%s2604_s3 + $0x64] ss:$8 sps:$4 sm:$0xff]   ;;  %v2038_v1 = vld [vmem:[%s2604_s3 + $0x60] ss:$8 sps:$4 sm:$0xff]   ;;  %v2039_v2 = vld [vmem:[%s2604_s3 + $0x74] ss:$8 sps:$4 sm:$0xff]  }
  0x2a   :  { %1927 = vmatmul.mubr.msk.bf16.gmra.mrb[12].mxu0 %vm121_vm0, %v73_v41  ;;  %499 = vmatprep.subr.bf16.mxu1 %v2036_v0  ;;  %v2041_v3 = vld [vmem:[%s2604_s3 + $0x70] ss:$8 sps:$4 sm:$0xff]   ;;  %v2320_v5 = vld [vmem:[%s2603_s2] ss:$0 sm:$0xff]  ;;  %v2044_v13 = vld [vmem:[%s2606_s5 + $0x48] sm:$0xff]  }
  0x2b   :  { %1930 = vmatprep.mubr.msk.bf16.mxu0 %vm121_vm0, %v74_v42  ;;  %500 = vmatpush1.bf16.msra.mxu1 %v2038_v1  ;;  %v2042_v11 = vld [vmem:[%s2606_s5 + $0x40] sm:$0xff]   ;;  %v2045_v19 = vld [vmem:[%s2606_s5 + $0x8] sm:$0xff]   ;;  %v2046_v22 = vld [vmem:[%s2606_s5 + $0x50] sm:$0xff]  }
  0x2c   :  { %501 = vmatprep.subr.bf16.mxu1 %v2039_v2  ;;  %v2043_v12 = vld [vmem:[%s2606_s5] sm:$0xff]   ;;  %1770 = vmatprep.subr.bf16.mxu0 %v2042_v11  ;;  %v2047_v28 = vld [vmem:[%s2606_s5 + $0x10] sm:$0xff]   ;;  %v2048_v31 = vld [vmem:[%s2606_s5 + $0x58] sm:$0xff]  }
  0x2d   :  { %1771 = vmatpush3.bf16.msra.mxu0 %v2043_v12  ;;  %v2049_v38 = vld [vmem:[%s2606_s5 + $0x18] sm:$0xff]   ;;  %v2050_v40 = vld [vmem:[%s2606_s5 + $0x60] sm:$0xff]   ;;  %v2052_v49 = vld [vmem:[%s2606_s5 + $0x68] sm:$0xff]  }
  0x2e   :  { %1772 = vmatprep.subr.bf16.mxu0 %v2044_v13  ;;  %v2051_v46 = vld [vmem:[%s2606_s5 + $0x20] sm:$0xff]   ;;  %v2053_v56 = vld [vmem:[%s2606_s5 + $0x28] sm:$0xff]   ;;  %v2054_v58 = vld [vmem:[%s2606_s5 + $0x70] sm:$0xff]  }
  0x2f   :  { %502 = vmatpush1.bf16.msra.mxu1 %v2041_v3  ;;  %v2055_v0 = vld [vmem:[%s2606_s5 + $0x30] sm:$0xff]  }
  0x31   :  { %1773 = vmatpush3.bf16.msra.mxu0 %v2045_v19 }
  0x32   :  { %1931 = vmatmul.mubr.msk.bf16.gmra.mrb[16].mxu0 %vm121_vm0, %v75_v47  ;;  %1774 = vmatprep.subr.bf16.mxu0 %v2046_v22 }
  0x33   :  { %1934 = vmatprep.mubr.msk.bf16.mxu0 %vm121_vm0, %v76_v48 }
  0x35   :  { %1775 = vmatpush3.bf16.msra.mxu0 %v2047_v28 }
  0x36   :  { %1776 = vmatprep.subr.bf16.mxu0 %v2048_v31 }
  0x39   :  { %1777 = vmatpush3.bf16.msra.mxu0 %v2049_v38 }
  0x3a   :  { %1935 = vmatmul.mubr.msk.bf16.gmra.mrb[20].mxu0 %vm121_vm0, %v77_v53  ;;  %1778 = vmatprep.subr.bf16.mxu0 %v2050_v40 }
  0x3b   :  { %1938 = vmatprep.mubr.msk.bf16.mxu0 %vm121_vm0, %v78_v54 }
  0x3d   :  { %1779 = vmatpush3.bf16.msra.mxu0 %v2051_v46 }
  0x3e   :  { %1780 = vmatprep.subr.bf16.mxu0 %v2052_v49 }
  0x41   :  { %1781 = vmatpush3.bf16.msra.mxu0 %v2053_v56 }
  0x42   :  { %1939 = vmatmul.mubr.msk.bf16.gmra.mrb[24].mxu0 %vm121_vm0, %v79_v59  ;;  %1782 = vmatprep.subr.bf16.mxu0 %v2054_v58 }
  0x43   :  { %1942 = vmatprep.mubr.msk.bf16.mxu0 %vm121_vm0, %v80_v60 }
  0x45   :  { %1783 = vmatpush3.bf16.msra.mxu0 %v2055_v0 }
  0x4a   :  { %1943 = vmatmul.mubr.msk.bf16.gmra.mrb[28].mxu0 %vm121_vm0, %v81_v63 }
  0xe5   :  { %v1916_v6 = vpop.f32.mrb[0].mxu0 }
  0xe6   :  { %v213_v7 = vadd.f32 %v1916_v6, %v2320_v5  ;;  %v204_v8 = vpop.f32.mrb[1].mxu0 }
  0xe7   :  { %v205_v9 = vadd.f32 %v2320_v5, %v204_v8  ;;  %v1917_v10 = vpop.f32.mrb[2].mxu0 }
  0xe8   :  { %v216_v14 = vadd.f32 %v1917_v10, %v2320_v5  ;;  %v207_v15 = vpop.f32.mrb[3].mxu0  ;;  %v333_v17 = vmax.f32 %v213_v7, 0.0 }
  0xe9   :  { %v208_v16 = vadd.f32 %v2320_v5, %v207_v15  ;;  %v331_v20 = vmax.f32 %v205_v9, 0.0 }
  0xea   :  { %v334_v18 = vmax.f32 %v216_v14, 0.0 }
  0xeb   :  { %v332_v21 = vmax.f32 %v208_v16, 0.0 }
  0xec   :  { %v364_v23 = vpack.c.bf16 %v334_v18, %v333_v17 }
  0xed   :  { %v363_v24 = vpack.c.bf16 %v332_v21, %v331_v20  ;;  %v1920_v25 = vpop.f32.mrb[4].mxu0 }
  0xee   :  { %v229_v26 = vadd.f32 %v1920_v25, %v2320_v5  ;;  %v220_v27 = vpop.f32.mrb[5].mxu0 }
  0xef   :  { %520 = vmatmul.mubr.bf16.vlgmr.msra.gmra.mrb[0].mxu1 %v363_v24  ;;  %v221_v29 = vadd.f32 %v2320_v5, %v220_v27  ;;  %v1921_v30 = vpop.f32.mrb[6].mxu0 }
  0xf0   :  { %v337_v32 = vmax.f32 %v229_v26, 0.0  ;;  %v232_v33 = vadd.f32 %v1921_v30, %v2320_v5  ;;  %v223_v34 = vpop.f32.mrb[7].mxu0  ;;  %529 = vmatprep.mubr.bf16.mxu1 %v2090_v4 }
  0xf1   :  { %v335_v35 = vmax.f32 %v221_v29, 0.0  ;;  %v224_v36 = vadd.f32 %v2320_v5, %v223_v34 }
  0xf2   :  { %v338_v37 = vmax.f32 %v232_v33, 0.0 }
  0xf3   :  { %v336_v39 = vmax.f32 %v224_v36, 0.0 }
  0xf4   :  { %v366_v41 = vpack.c.bf16 %v338_v37, %v337_v32 }
  0xf5   :  { %v365_v42 = vpack.c.bf16 %v336_v39, %v335_v35  ;;  %v1924_v43 = vpop.f32.mrb[8].mxu0 }
  0xf6   :  { %v245_v44 = vadd.f32 %v1924_v43, %v2320_v5  ;;  %v236_v45 = vpop.f32.mrb[9].mxu0 }
  0xf7   :  { %530 = vmatmul.mubr.bf16.gmra.mrb[4].mxu1 %v364_v23  ;;  %v237_v47 = vadd.f32 %v2320_v5, %v236_v45  ;;  %v1925_v48 = vpop.f32.mrb[10].mxu0 }
  0xf8   :  { %539 = vmatprep.mubr.bf16.mxu1 %v2090_v4  ;;  %v341_v50 = vmax.f32 %v245_v44, 0.0  ;;  %v248_v51 = vadd.f32 %v1925_v48, %v2320_v5  ;;  %v239_v52 = vpop.f32.mrb[11].mxu0 }
  0xf9   :  { %v339_v53 = vmax.f32 %v237_v47, 0.0  ;;  %v240_v54 = vadd.f32 %v2320_v5, %v239_v52 }
  0xfa   :  { %v342_v55 = vmax.f32 %v248_v51, 0.0 }
  0xfb   :  { %v340_v57 = vmax.f32 %v240_v54, 0.0 }
  0xfc   :  { %v368_v59 = vpack.c.bf16 %v342_v55, %v341_v50 }
  0xfd   :  { %v367_v60 = vpack.c.bf16 %v340_v57, %v339_v53  ;;  %v1928_v61 = vpop.f32.mrb[12].mxu0 }
  0xfe   :  { %v261_v62 = vadd.f32 %v1928_v61, %v2320_v5  ;;  %v252_v63 = vpop.f32.mrb[13].mxu0 }
  0xff   :  { %540 = vmatmul.mubr.bf16.gmra.mrb[8].mxu1 %v365_v42  ;;  %v253_v1 = vadd.f32 %v2320_v5, %v252_v63  ;;  %v1929_v2 = vpop.f32.mrb[14].mxu0 }
 0x100   :  { %549 = vmatprep.mubr.bf16.mxu1 %v2090_v4  ;;  %v345_v3 = vmax.f32 %v261_v62, 0.0  ;;  %v264_v6 = vadd.f32 %v1929_v2, %v2320_v5  ;;  %v255_v7 = vpop.f32.mrb[15].mxu0 }
 0x101   :  { %v343_v8 = vmax.f32 %v253_v1, 0.0  ;;  %v256_v9 = vadd.f32 %v2320_v5, %v255_v7 }
 0x102   :  { %v346_v10 = vmax.f32 %v264_v6, 0.0 }
 0x103   :  { %v344_v11 = vmax.f32 %v256_v9, 0.0  ;;  %v397_v9 = vlaneseq }
 0x104   :  { %v2383_v12 = vpack.c.bf16 %v346_v10, %v345_v3 }
 0x105   :  { %v369_v13 = vpack.c.bf16 %v344_v11, %v343_v8  ;;  %v1932_v14 = vpop.f32.mrb[16].mxu0  ;;  %v2057_v8 = vld [vmem:[%s2606_s5 + $0x38] sm:$0xff]   ;;  %v398_v10 = vshrl.u32 %v397_v9, 7 }
 0x106   :  { %v277_v15 = vadd.f32 %v1932_v14, %v2320_v5  ;;  %v268_v16 = vpop.f32.mrb[17].mxu0 }
 0x107   :  { %550 = vmatmul.mubr.bf16.gmra.mrb[12].mxu1 %v366_v41  ;;  %v269_v17 = vadd.f32 %v2320_v5, %v268_v16  ;;  %v1933_v18 = vpop.f32.mrb[18].mxu0  ;;  %v399_v11 = vsub.s32 0, %v398_v10 }
 0x108   :  { %559 = vmatprep.mubr.bf16.mxu1 %v2090_v4  ;;  %v349_v19 = vmax.f32 %v277_v15, 0.0  ;;  %v280_v20 = vadd.f32 %v1933_v18, %v2320_v5  ;;  %v271_v21 = vpop.f32.mrb[19].mxu0 }
 0x109   :  { %v347_v22 = vmax.f32 %v269_v17, 0.0  ;;  %v272_v23 = vadd.f32 %v2320_v5, %v271_v21 }
 0x10a   :  { %v350_v24 = vmax.f32 %v280_v20, 0.0 }
 0x10b   :  { %v348_v25 = vmax.f32 %v272_v23, 0.0 }
 0x10c   :  { %v372_v26 = vpack.c.bf16 %v350_v24, %v349_v19 }
 0x10d   :  { %v371_v27 = vpack.c.bf16 %v348_v25, %v347_v22  ;;  %v1936_v28 = vpop.f32.mrb[20].mxu0  ;;  %v2058_v22 = vld [vmem:[%s2608_s7] sm:$0xff]  }
 0x10e   :  { %v293_v29 = vadd.f32 %v1936_v28, %v2320_v5  ;;  %v284_v30 = vpop.f32.mrb[21].mxu0  ;;  %1994 = vmatprep.subr.bf16.mxu1 %v2058_v22 }
 0x10f   :  { %560 = vmatmul.mubr.bf16.gmra.mrb[16].mxu1 %v367_v60  ;;  %v285_v31 = vadd.f32 %v2320_v5, %v284_v30  ;;  %v1937_v32 = vpop.f32.mrb[22].mxu0 }
 0x110   :  { %569 = vmatprep.mubr.bf16.mxu1 %v2090_v4  ;;  %v353_v33 = vmax.f32 %v293_v29, 0.0  ;;  %v296_v34 = vadd.f32 %v1937_v32, %v2320_v5  ;;  %v287_v35 = vpop.f32.mrb[23].mxu0  ;;  %2002 = vmatpush3.bf16.msra.mxu1 %v2058_v22 }
 0x111   :  { %v351_v36 = vmax.f32 %v285_v31, 0.0  ;;  %v288_v37 = vadd.f32 %v2320_v5, %v287_v35 }
 0x112   :  { %v354_v38 = vmax.f32 %v296_v34, 0.0  ;;  %v2060_v34 = vld [vmem:[%s2608_s7 + $0x10] sm:$0xff]  }
 0x113   :  { %v352_v39 = vmax.f32 %v288_v37, 0.0 }
 0x114   :  { %v374_v40 = vpack.c.bf16 %v354_v38, %v353_v33 }
 0x115   :  { %v373_v41 = vpack.c.bf16 %v352_v39, %v351_v36  ;;  %v1940_v42 = vpop.f32.mrb[24].mxu0 }
 0x116   :  { %v309_v43 = vadd.f32 %v1940_v42, %v2320_v5  ;;  %v300_v44 = vpop.f32.mrb[25].mxu0 }
 0x117   :  { %570 = vmatmul.mubr.bf16.gmra.mrb[20].mxu1 %v368_v59  ;;  %v301_v45 = vadd.f32 %v2320_v5, %v300_v44  ;;  %v1941_v46 = vpop.f32.mrb[26].mxu0 }
 0x118   :  { %579 = vmatprep.mubr.bf16.mxu1 %v2090_v4  ;;  %v357_v47 = vmax.f32 %v309_v43, 0.0  ;;  %v312_v48 = vadd.f32 %v1941_v46, %v2320_v5  ;;  %v303_v49 = vpop.f32.mrb[27].mxu0 }
 0x119   :  { %v355_v50 = vmax.f32 %v301_v45, 0.0  ;;  %v304_v51 = vadd.f32 %v2320_v5, %v303_v49 }
 0x11a   :  { %v358_v52 = vmax.f32 %v312_v48, 0.0 }
 0x11b   :  { %v356_v53 = vmax.f32 %v304_v51, 0.0 }
 0x11c   :  { %v376_v54 = vpack.c.bf16 %v358_v52, %v357_v47 }
 0x11d   :  { %v375_v55 = vpack.c.bf16 %v356_v53, %v355_v50  ;;  %v1944_v56 = vpop.f32.mrb[28].mxu0 }
 0x11e   :  { %v325_v57 = vadd.f32 %v1944_v56, %v2320_v5  ;;  %v316_v58 = vpop.f32.mrb[29].mxu0 }
 0x11f   :  { %580 = vmatmul.mubr.bf16.gmra.mrb[24].mxu1 %v369_v13  ;;  %v317_v59 = vadd.f32 %v2320_v5, %v316_v58  ;;  %v1945_v60 = vpop.f32.mrb[30].mxu0  ;;  %v403_v13 = vsub.s32 1, %v398_v10 }
 0x120   :  { %589 = vmatprep.mubr.bf16.mxu1 %v2090_v4  ;;  %v361_v61 = vmax.f32 %v325_v57, 0.0  ;;  %v328_v62 = vadd.f32 %v1945_v60, %v2320_v5  ;;  %v319_v63 = vpop.f32.mrb[31].mxu0 }
 0x121   :  { %v359_v0 = vmax.f32 %v317_v59, 0.0  ;;  %v320_v1 = vadd.f32 %v2320_v5, %v319_v63  ;;  %v2056_v5 = vld [vmem:[%s2606_s5 + $0x78] sm:$0xff]  }
 0x122   :  { %v362_v2 = vmax.f32 %v328_v62, 0.0  ;;  %1784 = vmatprep.subr.bf16.mxu0 %v2056_v5 }
 0x123   :  { %v360_v3 = vmax.f32 %v320_v1, 0.0  ;;  %1785 = vmatpush3.bf16.msra.mxu0 %v2057_v8 }
 0x124   :  { %v378_v6 = vpack.c.bf16 %v362_v2, %v361_v61  ;;  %1946 = vmatprep.subr.bf16.mxu0 %v2058_v22 }
 0x125   :  { %v377_v7 = vpack.c.bf16 %v360_v3, %v359_v0 }
 0x127   :  { %590 = vmatmul.mubr.bf16.gmra.mrb[28].mxu1 %v2383_v12  ;;  %v395_v12 = vld [vmem:[%s2605_s4] sm:$0x3] }
 0x128   :  { %599 = vmatprep.mubr.bf16.mxu1 %v2090_v4  ;;  %v2423_v14 = vrot.slane %v395_v12, %v399_v11  ;;  %v2425_v15 = vrot.slane %v395_v12, %v403_v13 }
 0x12f   :  { %600 = vmatmul.mubr.bf16.gmra.mrb[32].mxu1 %v371_v27 }
 0x130   :  { %609 = vmatprep.mubr.bf16.mxu1 %v2090_v4 }
 0x137   :  { %610 = vmatmul.mubr.bf16.gmra.mrb[36].mxu1 %v372_v26  ;;  %v2059_v26 = vld [vmem:[%s2608_s7 + $0x8] sm:$0xff]  }
 0x138   :  { %619 = vmatprep.mubr.bf16.mxu1 %v2090_v4  ;;  %1995 = vmatprep.subr.bf16.mxu1 %v2059_v26 }
 0x139   :  { %2003 = vmatpush3.bf16.msra.mxu1 %v2059_v26 }
 0x13a   :  { %1996 = vmatprep.subr.bf16.mxu1 %v2060_v34 }
 0x13d   :  { %2004 = vmatpush3.bf16.msra.mxu1 %v2060_v34 }
 0x13f   :  { %620 = vmatmul.mubr.bf16.gmra.mrb[40].mxu1 %v373_v41 }
 0x140   :  { %629 = vmatprep.mubr.bf16.mxu1 %v2090_v4 }
 0x147   :  { %630 = vmatmul.mubr.bf16.gmra.mrb[44].mxu1 %v374_v40 }
 0x148   :  { %639 = vmatprep.mubr.bf16.mxu1 %v2090_v4 }
 0x14f   :  { %640 = vmatmul.mubr.bf16.gmra.mrb[48].mxu1 %v375_v55 }
 0x150   :  { %649 = vmatprep.mubr.bf16.mxu1 %v2090_v4 }
 0x157   :  { %650 = vmatmul.mubr.bf16.gmra.mrb[52].mxu1 %v376_v54 }
 0x158   :  { %659 = vmatprep.mubr.bf16.mxu1 %v2090_v4 }
 0x15f   :  { %660 = vmatmul.mubr.bf16.gmra.mrb[56].mxu1 %v377_v7 }
 0x160   :  { %669 = vmatprep.mubr.bf16.mxu1 %v2090_v4 }
 0x167   :  { %670 = vmatmul.mubr.bf16.gmra.mrb[60].mxu1 %v378_v6 }
 0x1c2   :  { %v521_v16 = vpop.f32.mrb[0].mxu1 }
 0x1c3   :  { %v522_v17 = vadd.f32 %v521_v16, %v2423_v14  ;;  %v523_v18 = vpop.f32.mrb[1].mxu1 }
 0x1c4   :  { %v524_v19 = vadd.f32 %v523_v18, %v2425_v15  ;;  %v525_v4 = vpop.f32.mrb[2].mxu1 }
 0x1c5   :  { %v526_v20 = vadd.f32 %v525_v4, %v2423_v14  ;;  %v527_v21 = vpop.f32.mrb[3].mxu1  ;;  %v680_v24 = vmax.f32 %v522_v17, 0.0 }
 0x1c6   :  { %v528_v23 = vadd.f32 %v527_v21, %v2425_v15  ;;  %v681_v27 = vmax.f32 %v524_v19, 0.0 }
 0x1c7   :  { %v682_v25 = vmax.f32 %v526_v20, 0.0 }
 0x1c8   :  { %v683_v28 = vmax.f32 %v528_v23, 0.0 }
 0x1c9   :  { %v744_v29 = vpack.c.bf16 %v682_v25, %v680_v24 }
 0x1ca   :  { %v745_v30 = vpack.c.bf16 %v683_v28, %v681_v27  ;;  %v531_v31 = vpop.f32.mrb[4].mxu1 }
 0x1cb   :  { %v532_v32 = vadd.f32 %v531_v31, %v2423_v14  ;;  %v533_v33 = vpop.f32.mrb[5].mxu1 }
 0x1cc   :  { %v534_v35 = vadd.f32 %v533_v33, %v2425_v15  ;;  %v535_v36 = vpop.f32.mrb[6].mxu1  ;;  %943 = vmatprep.mubr.bf16.mxu0 %v745_v30 }
 0x1cd   :  { %v536_v37 = vadd.f32 %v535_v36, %v2423_v14  ;;  %v537_v38 = vpop.f32.mrb[7].mxu1  ;;  %944 = vmatmul.mubr.bf16.vlgmr.msra.gmra.mrb[32].mxu0 %v744_v29  ;;  %v684_v40 = vmax.f32 %v532_v32, 0.0 }
 0x1ce   :  { %v538_v39 = vadd.f32 %v537_v38, %v2425_v15  ;;  %1947 = vmatpush3.bf16.msra.mxu0 %v2058_v22  ;;  %v685_v42 = vmax.f32 %v534_v35, 0.0 }
 0x1cf   :  { %v686_v41 = vmax.f32 %v536_v37, 0.0  ;;  %1948 = vmatprep.subr.bf16.mxu0 %v2059_v26 }
 0x1d0   :  { %v687_v43 = vmax.f32 %v538_v39, 0.0 }
 0x1d1   :  { %v746_v44 = vpack.c.bf16 %v686_v41, %v684_v40 }
 0x1d2   :  { %v747_v45 = vpack.c.bf16 %v687_v43, %v685_v42  ;;  %v541_v46 = vpop.f32.mrb[8].mxu1  ;;  %1949 = vmatpush3.bf16.msra.mxu0 %v2059_v26 }
 0x1d3   :  { %v542_v47 = vadd.f32 %v541_v46, %v2423_v14  ;;  %v543_v48 = vpop.f32.mrb[9].mxu1  ;;  %1950 = vmatprep.subr.bf16.mxu0 %v2060_v34 }
 0x1d4   :  { %v544_v49 = vadd.f32 %v543_v48, %v2425_v15  ;;  %v545_v50 = vpop.f32.mrb[10].mxu1  ;;  %951 = vmatprep.mubr.bf16.mxu0 %v747_v45 }
 0x1d5   :  { %v546_v51 = vadd.f32 %v545_v50, %v2423_v14  ;;  %v547_v52 = vpop.f32.mrb[11].mxu1  ;;  %952 = vmatmul.mubr.bf16.gmra.mrb[36].mxu0 %v746_v44  ;;  %v688_v54 = vmax.f32 %v542_v47, 0.0 }
 0x1d6   :  { %v548_v53 = vadd.f32 %v547_v52, %v2425_v15  ;;  %1951 = vmatpush3.bf16.msra.mxu0 %v2060_v34  ;;  %v689_v56 = vmax.f32 %v544_v49, 0.0 }
 0x1d7   :  { %v690_v55 = vmax.f32 %v546_v51, 0.0 }
 0x1d8   :  { %v691_v57 = vmax.f32 %v548_v53, 0.0 }
 0x1d9   :  { %v748_v58 = vpack.c.bf16 %v690_v55, %v688_v54 }
 0x1da   :  { %v749_v59 = vpack.c.bf16 %v691_v57, %v689_v56  ;;  %v551_v60 = vpop.f32.mrb[12].mxu1 }
 0x1db   :  { %v552_v61 = vadd.f32 %v551_v60, %v2423_v14  ;;  %v553_v62 = vpop.f32.mrb[13].mxu1 }
 0x1dc   :  { %v554_v63 = vadd.f32 %v553_v62, %v2425_v15  ;;  %v555_v0 = vpop.f32.mrb[14].mxu1  ;;  %959 = vmatprep.mubr.bf16.mxu0 %v749_v59 }
 0x1dd   :  { %v556_v1 = vadd.f32 %v555_v0, %v2423_v14  ;;  %v557_v2 = vpop.f32.mrb[15].mxu1  ;;  %960 = vmatmul.mubr.bf16.gmra.mrb[40].mxu0 %v748_v58  ;;  %v692_v6 = vmax.f32 %v552_v61, 0.0 }
 0x1de   :  { %v558_v3 = vadd.f32 %v557_v2, %v2425_v15  ;;  %v693_v5 = vmax.f32 %v554_v63, 0.0 }
 0x1df   :  { %v694_v7 = vmax.f32 %v556_v1, 0.0 }
 0x1e0   :  { %v695_v8 = vmax.f32 %v558_v3, 0.0 }
 0x1e1   :  { %v750_v9 = vpack.c.bf16 %v694_v7, %v692_v6 }
 0x1e2   :  { %v751_v10 = vpack.c.bf16 %v695_v8, %v693_v5  ;;  %v561_v11 = vpop.f32.mrb[16].mxu1 }
 0x1e3   :  { %v562_v12 = vadd.f32 %v561_v11, %v2423_v14  ;;  %v563_v13 = vpop.f32.mrb[17].mxu1 }
 0x1e4   :  { %v564_v16 = vadd.f32 %v563_v13, %v2425_v15  ;;  %v565_v17 = vpop.f32.mrb[18].mxu1  ;;  %967 = vmatprep.mubr.bf16.mxu0 %v751_v10 }
 0x1e5   :  { %v566_v18 = vadd.f32 %v565_v17, %v2423_v14  ;;  %v567_v19 = vpop.f32.mrb[19].mxu1  ;;  %968 = vmatmul.mubr.bf16.gmra.mrb[44].mxu0 %v750_v9  ;;  %v696_v20 = vmax.f32 %v562_v12, 0.0 }
 0x1e6   :  { %v568_v4 = vadd.f32 %v567_v19, %v2425_v15  ;;  %v697_v22 = vmax.f32 %v564_v16, 0.0 }
 0x1e7   :  { %v698_v21 = vmax.f32 %v566_v18, 0.0 }
 0x1e8   :  { %v699_v23 = vmax.f32 %v568_v4, 0.0 }
 0x1e9   :  { %v752_v24 = vpack.c.bf16 %v698_v21, %v696_v20 }
 0x1ea   :  { %v753_v25 = vpack.c.bf16 %v699_v23, %v697_v22  ;;  %v571_v26 = vpop.f32.mrb[20].mxu1 }
 0x1eb   :  { %v572_v27 = vadd.f32 %v571_v26, %v2423_v14  ;;  %v573_v28 = vpop.f32.mrb[21].mxu1 }
 0x1ec   :  { %v574_v29 = vadd.f32 %v573_v28, %v2425_v15  ;;  %v575_v30 = vpop.f32.mrb[22].mxu1  ;;  %975 = vmatprep.mubr.bf16.mxu0 %v753_v25 }
 0x1ed   :  { %v576_v31 = vadd.f32 %v575_v30, %v2423_v14  ;;  %v577_v32 = vpop.f32.mrb[23].mxu1  ;;  %976 = vmatmul.mubr.bf16.gmra.mrb[48].mxu0 %v752_v24  ;;  %v700_v34 = vmax.f32 %v572_v27, 0.0 }
 0x1ee   :  { %v578_v33 = vadd.f32 %v577_v32, %v2425_v15  ;;  %v701_v36 = vmax.f32 %v574_v29, 0.0 }
 0x1ef   :  { %v702_v35 = vmax.f32 %v576_v31, 0.0 }
 0x1f0   :  { %v703_v37 = vmax.f32 %v578_v33, 0.0 }
 0x1f1   :  { %v754_v38 = vpack.c.bf16 %v702_v35, %v700_v34 }
 0x1f2   :  { %v755_v39 = vpack.c.bf16 %v703_v37, %v701_v36  ;;  %v581_v40 = vpop.f32.mrb[24].mxu1 }
 0x1f3   :  { %v582_v41 = vadd.f32 %v581_v40, %v2423_v14  ;;  %v583_v42 = vpop.f32.mrb[25].mxu1 }
 0x1f4   :  { %v584_v43 = vadd.f32 %v583_v42, %v2425_v15  ;;  %v585_v44 = vpop.f32.mrb[26].mxu1  ;;  %983 = vmatprep.mubr.bf16.mxu0 %v755_v39 }
 0x1f5   :  { %v586_v45 = vadd.f32 %v585_v44, %v2423_v14  ;;  %v587_v46 = vpop.f32.mrb[27].mxu1  ;;  %984 = vmatmul.mubr.bf16.gmra.mrb[52].mxu0 %v754_v38  ;;  %v704_v48 = vmax.f32 %v582_v41, 0.0 }
 0x1f6   :  { %v588_v47 = vadd.f32 %v587_v46, %v2425_v15  ;;  %v705_v50 = vmax.f32 %v584_v43, 0.0 }
 0x1f7   :  { %v706_v49 = vmax.f32 %v586_v45, 0.0 }
 0x1f8   :  { %v707_v51 = vmax.f32 %v588_v47, 0.0 }
 0x1f9   :  { %v756_v52 = vpack.c.bf16 %v706_v49, %v704_v48 }
 0x1fa   :  { %v757_v53 = vpack.c.bf16 %v707_v51, %v705_v50  ;;  %v591_v54 = vpop.f32.mrb[28].mxu1 }
 0x1fb   :  { %v592_v55 = vadd.f32 %v591_v54, %v2423_v14  ;;  %v593_v56 = vpop.f32.mrb[29].mxu1 }
 0x1fc   :  { %v594_v57 = vadd.f32 %v593_v56, %v2425_v15  ;;  %v595_v58 = vpop.f32.mrb[30].mxu1  ;;  %991 = vmatprep.mubr.bf16.mxu0 %v757_v53  ;;  %v2061_v56 = vld [vmem:[%s2608_s7 + $0x18] sm:$0xff]  }
 0x1fd   :  { %v596_v59 = vadd.f32 %v595_v58, %v2423_v14  ;;  %v597_v60 = vpop.f32.mrb[31].mxu1  ;;  %992 = vmatmul.mubr.bf16.gmra.mrb[56].mxu0 %v756_v52  ;;  %v708_v62 = vmax.f32 %v592_v55, 0.0  ;;  %1952 = vmatprep.subr.bf16.mxu0 %v2061_v56 }
 0x1fe   :  { %v598_v61 = vadd.f32 %v597_v60, %v2425_v15  ;;  %v709_v0 = vmax.f32 %v594_v57, 0.0  ;;  %1997 = vmatprep.subr.bf16.mxu1 %v2061_v56  ;;  %1953 = vmatpush3.bf16.msra.mxu0 %v2061_v56 }
 0x1ff   :  { %v710_v63 = vmax.f32 %v596_v59, 0.0  ;;  %2005 = vmatpush3.bf16.msra.mxu1 %v2061_v56 }
 0x200   :  { %v711_v1 = vmax.f32 %v598_v61, 0.0 }
 0x201   :  { %v758_v2 = vpack.c.bf16 %v710_v63, %v708_v62 }
 0x202   :  { %v759_v3 = vpack.c.bf16 %v711_v1, %v709_v0  ;;  %v601_v6 = vpop.f32.mrb[32].mxu1  ;;  %v2062_v0 = vld [vmem:[%s2608_s7 + $0x20] sm:$0xff]  }
 0x203   :  { %v602_v7 = vadd.f32 %v601_v6, %v2423_v14  ;;  %v603_v5 = vpop.f32.mrb[33].mxu1  ;;  %1954 = vmatprep.subr.bf16.mxu0 %v2062_v0  ;;  %1998 = vmatprep.subr.bf16.mxu1 %v2062_v0 }
 0x204   :  { %v604_v8 = vadd.f32 %v603_v5, %v2425_v15  ;;  %v605_v9 = vpop.f32.mrb[34].mxu1  ;;  %999 = vmatprep.mubr.bf16.mxu0 %v759_v3  ;;  %1955 = vmatpush3.bf16.msra.mxu0 %v2062_v0 }
 0x205   :  { %v606_v10 = vadd.f32 %v605_v9, %v2423_v14  ;;  %v607_v11 = vpop.f32.mrb[35].mxu1  ;;  %1000 = vmatmul.mubr.bf16.gmra.mrb[60].mxu0 %v758_v2  ;;  %v712_v13 = vmax.f32 %v602_v7, 0.0  ;;  %v2063_v9 = vld [vmem:[%s2608_s7 + $0x28] sm:$0xff]   ;;  %2006 = vmatpush3.bf16.msra.mxu1 %v2062_v0 }
 0x206   :  { %v608_v12 = vadd.f32 %v607_v11, %v2425_v15  ;;  %v713_v17 = vmax.f32 %v604_v8, 0.0  ;;  %1956 = vmatprep.subr.bf16.mxu0 %v2063_v9  ;;  %1999 = vmatprep.subr.bf16.mxu1 %v2063_v9 }
 0x207   :  { %v714_v16 = vmax.f32 %v606_v10, 0.0 }
 0x208   :  { %v715_v18 = vmax.f32 %v608_v12, 0.0  ;;  %1957 = vmatpush3.bf16.msra.mxu0 %v2063_v9 }
 0x209   :  { %v760_v19 = vpack.c.bf16 %v714_v16, %v712_v13  ;;  %2007 = vmatpush3.bf16.msra.mxu1 %v2063_v9 }
 0x20a   :  { %v761_v4 = vpack.c.bf16 %v715_v18, %v713_v17  ;;  %v611_v20 = vpop.f32.mrb[36].mxu1 }
 0x20b   :  { %v612_v21 = vadd.f32 %v611_v20, %v2423_v14  ;;  %v613_v22 = vpop.f32.mrb[37].mxu1 }
 0x20c   :  { %v614_v23 = vadd.f32 %v613_v22, %v2425_v15  ;;  %v615_v24 = vpop.f32.mrb[38].mxu1  ;;  %1007 = vmatprep.mubr.bf16.mxu0 %v761_v4 }
 0x20d   :  { %v616_v25 = vadd.f32 %v615_v24, %v2423_v14  ;;  %v617_v26 = vpop.f32.mrb[39].mxu1  ;;  %1008 = vmatmul.mubr.bf16.gmra.mrb[64].mxu0 %v760_v19  ;;  %v716_v28 = vmax.f32 %v612_v21, 0.0  ;;  %v2064_v19 = vld [vmem:[%s2608_s7 + $0x30] sm:$0xff]  }
 0x20e   :  { %v618_v27 = vadd.f32 %v617_v26, %v2425_v15  ;;  %v717_v30 = vmax.f32 %v614_v23, 0.0  ;;  %1958 = vmatprep.subr.bf16.mxu0 %v2064_v19  ;;  %2000 = vmatprep.subr.bf16.mxu1 %v2064_v19  ;;  %v2065_v26 = vld [vmem:[%s2608_s7 + $0x38] sm:$0xff]  }
 0x20f   :  { %v718_v29 = vmax.f32 %v616_v25, 0.0  ;;  %1959 = vmatpush3.bf16.msra.mxu0 %v2064_v19  ;;  %2008 = vmatpush3.bf16.msra.mxu1 %v2064_v19 }
 0x210   :  { %v719_v31 = vmax.f32 %v618_v27, 0.0  ;;  %1960 = vmatprep.subr.bf16.mxu0 %v2065_v26  ;;  %2001 = vmatprep.subr.bf16.mxu1 %v2065_v26 }
 0x211   :  { %v762_v32 = vpack.c.bf16 %v718_v29, %v716_v28 }
 0x212   :  { %v763_v33 = vpack.c.bf16 %v719_v31, %v717_v30  ;;  %v621_v34 = vpop.f32.mrb[40].mxu1 }
 0x213   :  { %v622_v35 = vadd.f32 %v621_v34, %v2423_v14  ;;  %v623_v36 = vpop.f32.mrb[41].mxu1  ;;  %1961 = vmatpush3.bf16.msra.mxu0 %v2065_v26  ;;  %2009 = vmatpush3.bf16.msra.mxu1 %v2065_v26 }
 0x214   :  { %v624_v37 = vadd.f32 %v623_v36, %v2425_v15  ;;  %v625_v38 = vpop.f32.mrb[42].mxu1  ;;  %1015 = vmatprep.mubr.bf16.mxu0 %v763_v33 }
 0x215   :  { %v626_v39 = vadd.f32 %v625_v38, %v2423_v14  ;;  %v627_v40 = vpop.f32.mrb[43].mxu1  ;;  %1016 = vmatmul.mubr.bf16.gmra.mrb[68].mxu0 %v762_v32  ;;  %v720_v42 = vmax.f32 %v622_v35, 0.0 }
 0x216   :  { %v628_v41 = vadd.f32 %v627_v40, %v2425_v15  ;;  %v721_v44 = vmax.f32 %v624_v37, 0.0 }
 0x217   :  { %v722_v43 = vmax.f32 %v626_v39, 0.0 }
 0x218   :  { %v723_v45 = vmax.f32 %v628_v41, 0.0 }
 0x219   :  { %v764_v46 = vpack.c.bf16 %v722_v43, %v720_v42 }
 0x21a   :  { %v765_v47 = vpack.c.bf16 %v723_v45, %v721_v44  ;;  %v631_v48 = vpop.f32.mrb[44].mxu1 }
 0x21b   :  { %v632_v49 = vadd.f32 %v631_v48, %v2423_v14  ;;  %v633_v50 = vpop.f32.mrb[45].mxu1 }
 0x21c   :  { %v634_v51 = vadd.f32 %v633_v50, %v2425_v15  ;;  %v635_v52 = vpop.f32.mrb[46].mxu1  ;;  %1023 = vmatprep.mubr.bf16.mxu0 %v765_v47 }
 0x21d   :  { %v636_v53 = vadd.f32 %v635_v52, %v2423_v14  ;;  %v637_v54 = vpop.f32.mrb[47].mxu1  ;;  %1024 = vmatmul.mubr.bf16.gmra.mrb[72].mxu0 %v764_v46  ;;  %v724_v57 = vmax.f32 %v632_v49, 0.0 }
 0x21e   :  { %v638_v55 = vadd.f32 %v637_v54, %v2425_v15  ;;  %v725_v59 = vmax.f32 %v634_v51, 0.0 }
 0x21f   :  { %v726_v58 = vmax.f32 %v636_v53, 0.0 }
 0x220   :  { %v727_v60 = vmax.f32 %v638_v55, 0.0 }
 0x221   :  { %v766_v61 = vpack.c.bf16 %v726_v58, %v724_v57 }
 0x222   :  { %v767_v62 = vpack.c.bf16 %v727_v60, %v725_v59  ;;  %v641_v63 = vpop.f32.mrb[48].mxu1 }
 0x223   :  { %v642_v1 = vadd.f32 %v641_v63, %v2423_v14  ;;  %v643_v2 = vpop.f32.mrb[49].mxu1 }
 0x224   :  { %v644_v3 = vadd.f32 %v643_v2, %v2425_v15  ;;  %v645_v6 = vpop.f32.mrb[50].mxu1  ;;  %1031 = vmatprep.mubr.bf16.mxu0 %v767_v62  ;;  %v2518_v62 = vld [vmem:[%s2607_s6] ss:$0 sm:$0xff] }
 0x225   :  { %v646_v7 = vadd.f32 %v645_v6, %v2423_v14  ;;  %v647_v5 = vpop.f32.mrb[51].mxu1  ;;  %1032 = vmatmul.mubr.bf16.gmra.mrb[76].mxu0 %v766_v61  ;;  %v728_v10 = vmax.f32 %v642_v1, 0.0 }
 0x226   :  { %v648_v8 = vadd.f32 %v647_v5, %v2425_v15  ;;  %v729_v12 = vmax.f32 %v644_v3, 0.0 }
 0x227   :  { %v730_v11 = vmax.f32 %v646_v7, 0.0 }
 0x228   :  { %v731_v13 = vmax.f32 %v648_v8, 0.0 }
 0x229   :  { %v768_v16 = vpack.c.bf16 %v730_v11, %v728_v10 }
 0x22a   :  { %v769_v17 = vpack.c.bf16 %v731_v13, %v729_v12  ;;  %v651_v18 = vpop.f32.mrb[52].mxu1 }
 0x22b   :  { %v652_v4 = vadd.f32 %v651_v18, %v2423_v14  ;;  %v653_v20 = vpop.f32.mrb[53].mxu1 }
 0x22c   :  { %v654_v21 = vadd.f32 %v653_v20, %v2425_v15  ;;  %v655_v22 = vpop.f32.mrb[54].mxu1  ;;  %1039 = vmatprep.mubr.bf16.mxu0 %v769_v17 }
 0x22d   :  { %v656_v23 = vadd.f32 %v655_v22, %v2423_v14  ;;  %v657_v24 = vpop.f32.mrb[55].mxu1  ;;  %1040 = vmatmul.mubr.bf16.gmra.mrb[80].mxu0 %v768_v16  ;;  %v732_v27 = vmax.f32 %v652_v4, 0.0 }
 0x22e   :  { %v658_v25 = vadd.f32 %v657_v24, %v2425_v15  ;;  %v733_v29 = vmax.f32 %v654_v21, 0.0 }
 0x22f   :  { %v734_v28 = vmax.f32 %v656_v23, 0.0 }
 0x230   :  { %v735_v30 = vmax.f32 %v658_v25, 0.0 }
 0x231   :  { %v770_v31 = vpack.c.bf16 %v734_v28, %v732_v27 }
 0x232   :  { %v771_v32 = vpack.c.bf16 %v735_v30, %v733_v29  ;;  %v661_v33 = vpop.f32.mrb[56].mxu1 }
 0x233   :  { %v662_v34 = vadd.f32 %v661_v33, %v2423_v14  ;;  %v663_v35 = vpop.f32.mrb[57].mxu1 }
 0x234   :  { %v664_v36 = vadd.f32 %v663_v35, %v2425_v15  ;;  %v665_v37 = vpop.f32.mrb[58].mxu1  ;;  %1047 = vmatprep.mubr.bf16.mxu0 %v771_v32 }
 0x235   :  { %v666_v38 = vadd.f32 %v665_v37, %v2423_v14  ;;  %v667_v39 = vpop.f32.mrb[59].mxu1  ;;  %1048 = vmatmul.mubr.bf16.gmra.mrb[84].mxu0 %v770_v31  ;;  %v736_v41 = vmax.f32 %v662_v34, 0.0 }
 0x236   :  { %v668_v40 = vadd.f32 %v667_v39, %v2425_v15  ;;  %v737_v43 = vmax.f32 %v664_v36, 0.0 }
 0x237   :  { %v738_v42 = vmax.f32 %v666_v38, 0.0 }
 0x238   :  { %v739_v44 = vmax.f32 %v668_v40, 0.0 }
 0x239   :  { %v772_v45 = vpack.c.bf16 %v738_v42, %v736_v41 }
 0x23a   :  { %v773_v46 = vpack.c.bf16 %v739_v44, %v737_v43  ;;  %v671_v47 = vpop.f32.mrb[60].mxu1 }
 0x23b   :  { %v672_v48 = vadd.f32 %v671_v47, %v2423_v14  ;;  %v673_v49 = vpop.f32.mrb[61].mxu1 }
 0x23c   :  { %v674_v50 = vadd.f32 %v673_v49, %v2425_v15  ;;  %v675_v51 = vpop.f32.mrb[62].mxu1  ;;  %1055 = vmatprep.mubr.bf16.mxu0 %v773_v46 }
 0x23d   :  { %v676_v52 = vadd.f32 %v675_v51, %v2423_v14  ;;  %v677_v53 = vpop.f32.mrb[63].mxu1  ;;  %1056 = vmatmul.mubr.bf16.gmra.mrb[88].mxu0 %v772_v45  ;;  %v740_v55 = vmax.f32 %v672_v48, 0.0 }
 0x23e   :  { %v678_v54 = vadd.f32 %v677_v53, %v2425_v15  ;;  %v741_v57 = vmax.f32 %v674_v50, 0.0 }
 0x23f   :  { %v742_v56 = vmax.f32 %v676_v52, 0.0 }
 0x240   :  { %v743_v58 = vmax.f32 %v678_v54, 0.0 }
 0x241   :  { %v774_v59 = vpack.c.bf16 %v742_v56, %v740_v55 }
 0x242   :  { %v775_v60 = vpack.c.bf16 %v743_v58, %v741_v57 }
 0x244   :  { %1063 = vmatprep.mubr.bf16.mxu0 %v775_v60 }
 0x245   :  { %1064 = vmatmul.mubr.bf16.gmra.mrb[92].mxu0 %v774_v59 }
 0x2a0   :  { %v1786_v61 = vpop.f32.mrb[32].mxu0 }
 0x2a1   :  { %v1787_v63 = vpop.f32.mrb[33].mxu0 }
 0x2a2   :  { %v1788_v14 = vadd.f32 %v1787_v63, %v1786_v61  ;;  %v1789_v0 = vpop.f32.mrb[34].mxu0 }
 0x2a3   :  { %v1790_v1 = vpop.f32.mrb[35].mxu0 }
 0x2a4   :  { %v946_v15 = vadd.f32 %v1788_v14, %v2518_v62  ;;  %v1791_v2 = vadd.f32 %v1790_v1, %v1789_v0 }
 0x2a6   :  { %v949_v3 = vadd.f32 %v1791_v2, %v2518_v62  ;;  %v1072_v6 = vmax.f32 %v946_v15, 0.0 }
 0x2a8   :  { %v1073_v7 = vmax.f32 %v949_v3, 0.0  ;;  %v1792_v5 = vpop.f32.mrb[36].mxu0 }
 0x2a9   :  { %v1793_v8 = vpop.f32.mrb[37].mxu0 }
 0x2aa   :  { %v1794_v9 = vadd.f32 %v1793_v8, %v1792_v5  ;;  %v1795_v10 = vpop.f32.mrb[38].mxu0  ;;  %v1104_v11 = vpack.c.bf16 %v1073_v7, %v1072_v6 }
 0x2ab   :  { %v1796_v12 = vpop.f32.mrb[39].mxu0 }
 0x2ac   :  { %v954_v13 = vadd.f32 %v1794_v9, %v2518_v62  ;;  %v1797_v16 = vadd.f32 %v1796_v12, %v1795_v10  ;;  %1962 = vmatprep.mubr.bf16.mxu0 %v1104_v11 }
 0x2ae   :  { %v957_v17 = vadd.f32 %v1797_v16, %v2518_v62  ;;  %v1074_v18 = vmax.f32 %v954_v13, 0.0 }
 0x2b0   :  { %v1075_v19 = vmax.f32 %v957_v17, 0.0  ;;  %v1798_v4 = vpop.f32.mrb[40].mxu0 }
 0x2b1   :  { %v1799_v20 = vpop.f32.mrb[41].mxu0 }
 0x2b2   :  { %v1105_v21 = vpack.c.bf16 %v1075_v19, %v1074_v18  ;;  %v1800_v22 = vadd.f32 %v1799_v20, %v1798_v4  ;;  %v1801_v23 = vpop.f32.mrb[42].mxu0 }
 0x2b3   :  { %v1802_v24 = vpop.f32.mrb[43].mxu0 }
 0x2b4   :  { %v962_v25 = vadd.f32 %v1800_v22, %v2518_v62  ;;  %v1803_v26 = vadd.f32 %v1802_v24, %v1801_v23  ;;  %1963 = vmatmul.mubr.bf16.vlgmr.msra.gmra.mrb[96].mxu0 %v1105_v21 }
 0x2b6   :  { %v965_v27 = vadd.f32 %v1803_v26, %v2518_v62  ;;  %v1076_v28 = vmax.f32 %v962_v25, 0.0 }
 0x2b8   :  { %v1077_v29 = vmax.f32 %v965_v27, 0.0  ;;  %v1804_v30 = vpop.f32.mrb[44].mxu0 }
 0x2b9   :  { %v1805_v31 = vpop.f32.mrb[45].mxu0 }
 0x2ba   :  { %v1806_v32 = vadd.f32 %v1805_v31, %v1804_v30  ;;  %v1807_v33 = vpop.f32.mrb[46].mxu0  ;;  %v1106_v34 = vpack.c.bf16 %v1077_v29, %v1076_v28 }
 0x2bb   :  { %v1808_v35 = vpop.f32.mrb[47].mxu0 }
 0x2bc   :  { %v970_v36 = vadd.f32 %v1806_v32, %v2518_v62  ;;  %v1809_v37 = vadd.f32 %v1808_v35, %v1807_v33  ;;  %1966 = vmatprep.mubr.bf16.mxu1 %v1106_v34 }
 0x2be   :  { %v973_v38 = vadd.f32 %v1809_v37, %v2518_v62  ;;  %v1078_v39 = vmax.f32 %v970_v36, 0.0 }
 0x2c0   :  { %v1079_v40 = vmax.f32 %v973_v38, 0.0  ;;  %v1810_v41 = vpop.f32.mrb[48].mxu0 }
 0x2c1   :  { %v1811_v42 = vpop.f32.mrb[49].mxu0 }
 0x2c2   :  { %v1107_v43 = vpack.c.bf16 %v1079_v40, %v1078_v39  ;;  %v1812_v44 = vadd.f32 %v1811_v42, %v1810_v41  ;;  %v1813_v45 = vpop.f32.mrb[50].mxu0 }
 0x2c3   :  { %v1814_v46 = vpop.f32.mrb[51].mxu0 }
 0x2c4   :  { %v978_v47 = vadd.f32 %v1812_v44, %v2518_v62  ;;  %v1815_v48 = vadd.f32 %v1814_v46, %v1813_v45  ;;  %1967 = vmatmul.mubr.bf16.vlgmr.msra.gmra.mrb[64].mxu1 %v1107_v43 }
 0x2c6   :  { %v981_v49 = vadd.f32 %v1815_v48, %v2518_v62  ;;  %v1080_v50 = vmax.f32 %v978_v47, 0.0 }
 0x2c8   :  { %v1081_v51 = vmax.f32 %v981_v49, 0.0  ;;  %v1816_v52 = vpop.f32.mrb[52].mxu0 }
 0x2c9   :  { %v1817_v53 = vpop.f32.mrb[53].mxu0 }
 0x2ca   :  { %v1818_v54 = vadd.f32 %v1817_v53, %v1816_v52  ;;  %v1819_v55 = vpop.f32.mrb[54].mxu0  ;;  %v1108_v56 = vpack.c.bf16 %v1081_v51, %v1080_v50 }
 0x2cb   :  { %v1820_v57 = vpop.f32.mrb[55].mxu0 }
 0x2cc   :  { %v986_v58 = vadd.f32 %v1818_v54, %v2518_v62  ;;  %v1821_v59 = vadd.f32 %v1820_v57, %v1819_v55  ;;  %1970 = vmatprep.mubr.bf16.mxu1 %v1108_v56 }
 0x2ce   :  { %v989_v60 = vadd.f32 %v1821_v59, %v2518_v62  ;;  %v1082_v61 = vmax.f32 %v986_v58, 0.0 }
 0x2d0   :  { %v1083_v63 = vmax.f32 %v989_v60, 0.0  ;;  %v1822_v14 = vpop.f32.mrb[56].mxu0 }
 0x2d1   :  { %v1823_v0 = vpop.f32.mrb[57].mxu0 }
 0x2d2   :  { %v1824_v1 = vadd.f32 %v1823_v0, %v1822_v14  ;;  %v1825_v15 = vpop.f32.mrb[58].mxu0  ;;  %v1109_v2 = vpack.c.bf16 %v1083_v63, %v1082_v61 }
 0x2d3   :  { %v1826_v3 = vpop.f32.mrb[59].mxu0 }
 0x2d4   :  { %v994_v6 = vadd.f32 %v1824_v1, %v2518_v62  ;;  %v1827_v7 = vadd.f32 %v1826_v3, %v1825_v15  ;;  %1971 = vmatmul.mubr.bf16.gmra.mrb[68].mxu1 %v1109_v2 }
 0x2d6   :  { %v997_v5 = vadd.f32 %v1827_v7, %v2518_v62  ;;  %v1084_v8 = vmax.f32 %v994_v6, 0.0 }
 0x2d8   :  { %v1085_v9 = vmax.f32 %v997_v5, 0.0  ;;  %v1828_v10 = vpop.f32.mrb[60].mxu0 }
 0x2d9   :  { %v1829_v11 = vpop.f32.mrb[61].mxu0 }
 0x2da   :  { %v1830_v12 = vadd.f32 %v1829_v11, %v1828_v10  ;;  %v1831_v13 = vpop.f32.mrb[62].mxu0  ;;  %v1110_v16 = vpack.c.bf16 %v1085_v9, %v1084_v8 }
 0x2db   :  { %v1832_v17 = vpop.f32.mrb[63].mxu0 }
 0x2dc   :  { %v1002_v18 = vadd.f32 %v1830_v12, %v2518_v62  ;;  %v1833_v19 = vadd.f32 %v1832_v17, %v1831_v13  ;;  %1974 = vmatprep.mubr.bf16.mxu1 %v1110_v16 }
 0x2de   :  { %v1005_v4 = vadd.f32 %v1833_v19, %v2518_v62  ;;  %v1086_v20 = vmax.f32 %v1002_v18, 0.0 }
 0x2e0   :  { %v1087_v21 = vmax.f32 %v1005_v4, 0.0  ;;  %v1834_v22 = vpop.f32.mrb[64].mxu0 }
 0x2e1   :  { %v1835_v23 = vpop.f32.mrb[65].mxu0 }
 0x2e2   :  { %v1836_v24 = vadd.f32 %v1835_v23, %v1834_v22  ;;  %v1837_v25 = vpop.f32.mrb[66].mxu0  ;;  %v1111_v26 = vpack.c.bf16 %v1087_v21, %v1086_v20 }
 0x2e3   :  { %v1838_v27 = vpop.f32.mrb[67].mxu0 }
 0x2e4   :  { %v1010_v28 = vadd.f32 %v1836_v24, %v2518_v62  ;;  %v1839_v29 = vadd.f32 %v1838_v27, %v1837_v25  ;;  %1975 = vmatmul.mubr.bf16.gmra.mrb[72].mxu1 %v1111_v26 }
 0x2e6   :  { %v1013_v30 = vadd.f32 %v1839_v29, %v2518_v62  ;;  %v1088_v31 = vmax.f32 %v1010_v28, 0.0 }
 0x2e8   :  { %v1089_v32 = vmax.f32 %v1013_v30, 0.0  ;;  %v1840_v33 = vpop.f32.mrb[68].mxu0 }
 0x2e9   :  { %v1841_v34 = vpop.f32.mrb[69].mxu0 }
 0x2ea   :  { %v1842_v35 = vadd.f32 %v1841_v34, %v1840_v33  ;;  %v1843_v36 = vpop.f32.mrb[70].mxu0  ;;  %v1112_v37 = vpack.c.bf16 %v1089_v32, %v1088_v31 }
 0x2eb   :  { %v1844_v38 = vpop.f32.mrb[71].mxu0 }
 0x2ec   :  { %v1018_v39 = vadd.f32 %v1842_v35, %v2518_v62  ;;  %v1845_v40 = vadd.f32 %v1844_v38, %v1843_v36  ;;  %1978 = vmatprep.mubr.bf16.mxu1 %v1112_v37 }
 0x2ee   :  { %v1021_v41 = vadd.f32 %v1845_v40, %v2518_v62  ;;  %v1090_v42 = vmax.f32 %v1018_v39, 0.0 }
 0x2f0   :  { %v1091_v43 = vmax.f32 %v1021_v41, 0.0  ;;  %v1846_v44 = vpop.f32.mrb[72].mxu0 }
 0x2f1   :  { %v1847_v45 = vpop.f32.mrb[73].mxu0 }
 0x2f2   :  { %v1848_v46 = vadd.f32 %v1847_v45, %v1846_v44  ;;  %v1849_v47 = vpop.f32.mrb[74].mxu0  ;;  %v1113_v48 = vpack.c.bf16 %v1091_v43, %v1090_v42 }
 0x2f3   :  { %v1850_v49 = vpop.f32.mrb[75].mxu0 }
 0x2f4   :  { %v1026_v50 = vadd.f32 %v1848_v46, %v2518_v62  ;;  %v1851_v51 = vadd.f32 %v1850_v49, %v1849_v47  ;;  %1979 = vmatmul.mubr.bf16.gmra.mrb[76].mxu1 %v1113_v48  ;;  %v2555_v49 = vld [vmem:[%s2609_s8] ss:$0 sm:$0xff]  ;;  %s2091_s8 = smov [#allocation2]  }
 0x2f5   :  { %s1517_s26 = sshll.u32 %s2091_s8, 4  ;;  %s1518_s26 = int_to_ptr.vmem [resolvable:$true] %s1517_s26 }
 0x2f6   :  { %v1029_v52 = vadd.f32 %v1851_v51, %v2518_v62  ;;  %v1092_v53 = vmax.f32 %v1026_v50, 0.0  ;;  %s2066_s27 = scalar_lea.vmem %s1518_s26, 2048  ;;  %p2071_p1 = scmp.lt.s32.totalorder %s1518_s26, %s1518_s26 }
 0x2f7   :  { %p2067_p0 = scmp.ne.s32.totalorder %s1518_s26, %s2066_s27  ;;  %p2072_p2 = scmp.lt.s32.totalorder %s2066_s27, %s2066_s27 }
 0x2f8   :  { %v1093_v54 = vmax.f32 %v1029_v52, 0.0  ;;  %v1852_v55 = vpop.f32.mrb[76].mxu0 }
 0x2f9   :  { %v1853_v56 = vpop.f32.mrb[77].mxu0  ;;  %p2073_p3 = por %p2072_p2, %p2071_p1 }
 0x2fa   :  { %v1854_v57 = vadd.f32 %v1853_v56, %v1852_v55  ;;  %v1855_v58 = vpop.f32.mrb[78].mxu0  ;;  %v1114_v59 = vpack.c.bf16 %v1093_v54, %v1092_v53 }
 0x2fb   :  { %v1856_v60 = vpop.f32.mrb[79].mxu0  ;;  %p2074_p4 = pnand %p2073_p3, %p2067_p0 }
 0x2fc   :  { %v1034_v61 = vadd.f32 %v1854_v57, %v2518_v62  ;;  %v1857_v63 = vadd.f32 %v1856_v60, %v1855_v58  ;;  %1982 = vmatprep.mubr.bf16.mxu1 %v1114_v59 }
 0x2fe   :  { %v1037_v14 = vadd.f32 %v1857_v63, %v2518_v62  ;;  %v1094_v0 = vmax.f32 %v1034_v61, 0.0 }
 0x300   :  { %v1095_v1 = vmax.f32 %v1037_v14, 0.0  ;;  %v1858_v15 = vpop.f32.mrb[80].mxu0 }
 0x301   :  { %v1859_v2 = vpop.f32.mrb[81].mxu0 }
 0x302   :  { %v1860_v3 = vadd.f32 %v1859_v2, %v1858_v15  ;;  %v1861_v6 = vpop.f32.mrb[82].mxu0  ;;  %v1115_v7 = vpack.c.bf16 %v1095_v1, %v1094_v0 }
 0x303   :  { %v1862_v5 = vpop.f32.mrb[83].mxu0 }
 0x304   :  { %v1042_v8 = vadd.f32 %v1860_v3, %v2518_v62  ;;  %v1863_v9 = vadd.f32 %v1862_v5, %v1861_v6  ;;  %1983 = vmatmul.mubr.bf16.gmra.mrb[80].mxu1 %v1115_v7 }
 0x306   :  { %v1045_v10 = vadd.f32 %v1863_v9, %v2518_v62  ;;  %v1096_v11 = vmax.f32 %v1042_v8, 0.0 }
 0x308   :  { %v1097_v12 = vmax.f32 %v1045_v10, 0.0  ;;  %v1864_v13 = vpop.f32.mrb[84].mxu0 }
 0x309   :  { %v1865_v16 = vpop.f32.mrb[85].mxu0 }
 0x30a   :  { %v1866_v17 = vadd.f32 %v1865_v16, %v1864_v13  ;;  %v1867_v18 = vpop.f32.mrb[86].mxu0  ;;  %v1116_v19 = vpack.c.bf16 %v1097_v12, %v1096_v11 }
 0x30b   :  { %v1868_v4 = vpop.f32.mrb[87].mxu0 }
 0x30c   :  { %v1050_v20 = vadd.f32 %v1866_v17, %v2518_v62  ;;  %v1869_v21 = vadd.f32 %v1868_v4, %v1867_v18  ;;  %1986 = vmatprep.mubr.bf16.mxu1 %v1116_v19 }
 0x30e   :  { %v1053_v22 = vadd.f32 %v1869_v21, %v2518_v62  ;;  %v1098_v23 = vmax.f32 %v1050_v20, 0.0 }
 0x310   :  { %v1099_v24 = vmax.f32 %v1053_v22, 0.0  ;;  %v1870_v25 = vpop.f32.mrb[88].mxu0 }
 0x311   :  { %v1871_v26 = vpop.f32.mrb[89].mxu0 }
 0x312   :  { %v1872_v27 = vadd.f32 %v1871_v26, %v1870_v25  ;;  %v1873_v28 = vpop.f32.mrb[90].mxu0  ;;  %v1117_v29 = vpack.c.bf16 %v1099_v24, %v1098_v23 }
 0x313   :  { %v1874_v30 = vpop.f32.mrb[91].mxu0 }
 0x314   :  { %v1058_v31 = vadd.f32 %v1872_v27, %v2518_v62  ;;  %v1875_v32 = vadd.f32 %v1874_v30, %v1873_v28  ;;  %1987 = vmatmul.mubr.bf16.gmra.mrb[84].mxu1 %v1117_v29 }
 0x316   :  { %v1061_v33 = vadd.f32 %v1875_v32, %v2518_v62  ;;  %v1100_v34 = vmax.f32 %v1058_v31, 0.0 }
 0x318   :  { %v1101_v35 = vmax.f32 %v1061_v33, 0.0  ;;  %v1876_v36 = vpop.f32.mrb[92].mxu0 }
 0x319   :  { %v1877_v37 = vpop.f32.mrb[93].mxu0 }
 0x31a   :  { %v1878_v38 = vadd.f32 %v1877_v37, %v1876_v36  ;;  %v1879_v39 = vpop.f32.mrb[94].mxu0  ;;  %v1118_v40 = vpack.c.bf16 %v1101_v35, %v1100_v34 }
 0x31b   :  { %v1880_v41 = vpop.f32.mrb[95].mxu0 }
 0x31c   :  { %v1066_v42 = vadd.f32 %v1878_v38, %v2518_v62  ;;  %v1881_v43 = vadd.f32 %v1880_v41, %v1879_v39  ;;  %1990 = vmatprep.mubr.bf16.mxu1 %v1118_v40 }
 0x31e   :  { %v1069_v44 = vadd.f32 %v1881_v43, %v2518_v62  ;;  %v1102_v45 = vmax.f32 %v1066_v42, 0.0 }
 0x320   :  { %v1103_v46 = vmax.f32 %v1069_v44, 0.0 }
 0x322   :  { %v1119_v47 = vpack.c.bf16 %v1103_v46, %v1102_v45 }
 0x324   :  { %1991 = vmatmul.mubr.bf16.gmra.mrb[88].mxu1 %v1119_v47 }
 0x387   :  { %v1964_v48 = vpop.f32.mrb[96].mxu0 }
 0x388   :  { %v1225_v50 = vpop.f32.mrb[97].mxu0  ;;  %v1234_v52 = vadd.f32 %v1964_v48, %v2555_v49 }
 0x389   :  { %v1965_v51 = vpop.f32.mrb[98].mxu0  ;;  %v1226_v55 = vadd.f32 %v2555_v49, %v1225_v50 }
 0x38a   :  { %v1237_v53 = vadd.f32 %v1965_v51, %v2555_v49  ;;  %v1228_v54 = vpop.f32.mrb[99].mxu0 }
 0x38b   :  { %v1229_v62 = vadd.f32 %v2555_v49, %v1228_v54 }
 0x38c   :  { %v1663_v56 = vpack.c.bf16 %v1237_v53, %v1234_v52 }
 0x38d   :  { %v1658_v57 = vpack.c.bf16 %v1229_v62, %v1226_v55 }
 0x38e   :  { %1735 = vst [vmem:[#allocation2 + $0x8] sm:$0xff] %v1663_v56  }
 0x38f   :  { %1659 = vst [vmem:[#allocation2] sm:$0xff] %v1658_v57  }
 0x397   :  { %v1968_v58 = vpop.f32.mrb[64].mxu1 }
 0x398   :  { %v1241_v59 = vpop.f32.mrb[65].mxu1  ;;  %v1250_v61 = vadd.f32 %v1968_v58, %v2555_v49 }
 0x399   :  { %v1969_v60 = vpop.f32.mrb[66].mxu1  ;;  %v1242_v0 = vadd.f32 %v2555_v49, %v1241_v59 }
 0x39a   :  { %v1253_v63 = vadd.f32 %v1969_v60, %v2555_v49  ;;  %v1244_v14 = vpop.f32.mrb[67].mxu1 }
 0x39b   :  { %v1245_v1 = vadd.f32 %v2555_v49, %v1244_v14 }
 0x39c   :  { %v1673_v15 = vpack.c.bf16 %v1253_v63, %v1250_v61 }
 0x39d   :  { %v1668_v2 = vpack.c.bf16 %v1245_v1, %v1242_v0 }
 0x39e   :  { %1737 = vst [vmem:[#allocation2 + $0x18] sm:$0xff] %v1673_v15  }
 0x39f   :  { %1736 = vst [vmem:[#allocation2 + $0x10] sm:$0xff] %v1668_v2  }
 0x3a7   :  { %v1972_v3 = vpop.f32.mrb[68].mxu1 }
 0x3a8   :  { %v1257_v6 = vpop.f32.mrb[69].mxu1  ;;  %v1266_v5 = vadd.f32 %v1972_v3, %v2555_v49 }
 0x3a9   :  { %v1973_v7 = vpop.f32.mrb[70].mxu1  ;;  %v1258_v10 = vadd.f32 %v2555_v49, %v1257_v6 }
 0x3aa   :  { %v1269_v8 = vadd.f32 %v1973_v7, %v2555_v49  ;;  %v1260_v9 = vpop.f32.mrb[71].mxu1 }
 0x3ab   :  { %v1261_v11 = vadd.f32 %v2555_v49, %v1260_v9 }
 0x3ac   :  { %v1683_v12 = vpack.c.bf16 %v1269_v8, %v1266_v5 }
 0x3ad   :  { %v1678_v13 = vpack.c.bf16 %v1261_v11, %v1258_v10 }
 0x3ae   :  { %1739 = vst [vmem:[#allocation2 + $0x28] sm:$0xff] %v1683_v12  }
 0x3af   :  { %1738 = vst [vmem:[#allocation2 + $0x20] sm:$0xff] %v1678_v13  }
 0x3b7   :  { %v1976_v16 = vpop.f32.mrb[72].mxu1 }
 0x3b8   :  { %v1273_v17 = vpop.f32.mrb[73].mxu1  ;;  %v1282_v19 = vadd.f32 %v1976_v16, %v2555_v49 }
 0x3b9   :  { %v1977_v18 = vpop.f32.mrb[74].mxu1  ;;  %v1274_v21 = vadd.f32 %v2555_v49, %v1273_v17 }
 0x3ba   :  { %v1285_v4 = vadd.f32 %v1977_v18, %v2555_v49  ;;  %v1276_v20 = vpop.f32.mrb[75].mxu1 }
 0x3bb   :  { %v1277_v22 = vadd.f32 %v2555_v49, %v1276_v20 }
 0x3bc   :  { %v1693_v23 = vpack.c.bf16 %v1285_v4, %v1282_v19 }
 0x3bd   :  { %v1688_v24 = vpack.c.bf16 %v1277_v22, %v1274_v21 }
 0x3be   :  { %1741 = vst [vmem:[#allocation2 + $0x38] sm:$0xff] %v1693_v23  }
 0x3bf   :  { %1740 = vst [vmem:[#allocation2 + $0x30] sm:$0xff] %v1688_v24  }
 0x3c7   :  { %v1980_v25 = vpop.f32.mrb[76].mxu1 }
 0x3c8   :  { %v1289_v26 = vpop.f32.mrb[77].mxu1  ;;  %v1298_v28 = vadd.f32 %v1980_v25, %v2555_v49 }
 0x3c9   :  { %v1981_v27 = vpop.f32.mrb[78].mxu1  ;;  %v1290_v31 = vadd.f32 %v2555_v49, %v1289_v26 }
 0x3ca   :  { %v1301_v29 = vadd.f32 %v1981_v27, %v2555_v49  ;;  %v1292_v30 = vpop.f32.mrb[79].mxu1 }
 0x3cb   :  { %v1293_v32 = vadd.f32 %v2555_v49, %v1292_v30 }
 0x3cc   :  { %v1703_v33 = vpack.c.bf16 %v1301_v29, %v1298_v28 }
 0x3cd   :  { %v1698_v34 = vpack.c.bf16 %v1293_v32, %v1290_v31 }
 0x3ce   :  { %1743 = vst [vmem:[#allocation2 + $0x48] sm:$0xff] %v1703_v33  }
 0x3cf   :  { %1742 = vst [vmem:[#allocation2 + $0x40] sm:$0xff] %v1698_v34  }
 0x3d7   :  { %v1984_v35 = vpop.f32.mrb[80].mxu1 }
 0x3d8   :  { %v1305_v36 = vpop.f32.mrb[81].mxu1  ;;  %v1314_v38 = vadd.f32 %v1984_v35, %v2555_v49 }
 0x3d9   :  { %v1985_v37 = vpop.f32.mrb[82].mxu1  ;;  %v1306_v41 = vadd.f32 %v2555_v49, %v1305_v36 }
 0x3da   :  { %v1317_v39 = vadd.f32 %v1985_v37, %v2555_v49  ;;  %v1308_v40 = vpop.f32.mrb[83].mxu1 }
 0x3db   :  { %v1309_v42 = vadd.f32 %v2555_v49, %v1308_v40 }
 0x3dc   :  { %v1713_v43 = vpack.c.bf16 %v1317_v39, %v1314_v38 }
 0x3dd   :  { %v1708_v44 = vpack.c.bf16 %v1309_v42, %v1306_v41 }
 0x3de   :  { %1745 = vst [vmem:[#allocation2 + $0x58] sm:$0xff] %v1713_v43  }
 0x3df   :  { %1744 = vst [vmem:[#allocation2 + $0x50] sm:$0xff] %v1708_v44  }
 0x3e7   :  { %v1988_v45 = vpop.f32.mrb[84].mxu1 }
 0x3e8   :  { %v1321_v46 = vpop.f32.mrb[85].mxu1  ;;  %v1330_v48 = vadd.f32 %v1988_v45, %v2555_v49 }
 0x3e9   :  { %v1989_v47 = vpop.f32.mrb[86].mxu1  ;;  %v1322_v52 = vadd.f32 %v2555_v49, %v1321_v46 }
 0x3ea   :  { %v1333_v50 = vadd.f32 %v1989_v47, %v2555_v49  ;;  %v1324_v51 = vpop.f32.mrb[87].mxu1 }
 0x3eb   :  { %v1325_v53 = vadd.f32 %v2555_v49, %v1324_v51 }
 0x3ec   :  { %v1723_v54 = vpack.c.bf16 %v1333_v50, %v1330_v48 }
 0x3ed   :  { %v1718_v55 = vpack.c.bf16 %v1325_v53, %v1322_v52 }
 0x3ee   :  { %1747 = vst [vmem:[#allocation2 + $0x68] sm:$0xff] %v1723_v54  }
 0x3ef   :  { %1746 = vst [vmem:[#allocation2 + $0x60] sm:$0xff] %v1718_v55  }
 0x3f7   :  { %v1992_v62 = vpop.f32.mrb[88].mxu1 }
 0x3f8   :  { %v1337_v56 = vpop.f32.mrb[89].mxu1  ;;  %v1346_v58 = vadd.f32 %v1992_v62, %v2555_v49 }
 0x3f9   :  { %v1993_v57 = vpop.f32.mrb[90].mxu1  ;;  %v1338_v61 = vadd.f32 %v2555_v49, %v1337_v56 }
 0x3fa   :  { %v1349_v59 = vadd.f32 %v1993_v57, %v2555_v49  ;;  %v1340_v60 = vpop.f32.mrb[91].mxu1 }
 0x3fb   :  { %v1341_v63 = vadd.f32 %v2555_v49, %v1340_v60 }
 0x3fc   :  { %v1733_v14 = vpack.c.bf16 %v1349_v59, %v1346_v58 }
 0x3fd   :  { %v1728_v0 = vpack.c.bf16 %v1341_v63, %v1338_v61 }
 0x3fe   :  { %1749 = vst [vmem:[#allocation2 + $0x78] sm:$0xff] %v1733_v14  }
 0x3ff   :  { %1748 = vst [vmem:[#allocation2 + $0x70] sm:$0xff] %v1728_v0  }
 0x400   :  { %2077 = shalt.err (!%p2074_p4)
}
 0x401   :  { %s2078_s1 = scalar_lea.hbm %s2610_s9, 2048 }
 0x402   :  { %p2079_p5 = scmp.ne.s32.totalorder %s2610_s9, %s2078_s1  ;;  %p2082_p6 = scmp.lt.u32.totalorder %s2078_s1, %s2610_s9 }
 0x404   :  { %p2084_p7 = pnand %p2082_p6, %p2079_p5 }
 0x406   :  { %2087 = shalt.err (!%p2084_p7)
}
 0x407   :  { %s2092_s5 = smov 64   ;;  %s2093_s11 = smov 4  }
 0x408   :  { %1523 = dma.vmem_to_hbm [thread:$0]  %s1518_s26, 2048, %s2610_s9, [#allocation3], %s2092_s5, %s2092_s5, %s2093_s11  }
 0x409   :  { %2088 = dma.done.wait [#allocation3], 2048  }
 0x40a   :  { %2089 = vsyncadd [#allocation3], 4294965248 }
 0x40b   :  { %1527 = vsyncpa [#allocation3], 1 }

</bundles_post_ra>
